<compile_context>
chip_gen: v5e
topology: v5e:2x2
jax: 0.10.0
libtpu: 0.0.40
codegen_flags: <defaults>
</compile_context>

<pallas_src>
import functools

import jax
import jax.numpy as jnp
from jax.experimental import pallas as pl
from jax.experimental.pallas import tpu as pltpu


# Logical / lane-padded layer sizes.
D_IN = 256
H0, H0_P = 1000, 1024
H1, H1_P = 200, 256
D_OUT, D_OUT_P = 1, 128


def _round_up(x, m):
    return (x + m - 1) // m * m


# -----------------------------------------------------------------------------
# Pallas kernel: fused Linear(256,1000)+ReLU -> Linear(1000,200)+ReLU
#                -> Linear(200,1)+sigmoid  (all dims lane-padded)
# -----------------------------------------------------------------------------
def _prior_kernel(x_ref, w0_ref, b0_ref, w1_ref, b1_ref, w2_ref, b2_ref, out_ref):
    """
    x_ref  : [TB, 256]   f32
    w0_ref : [256, 1024] bf16   b0_ref : [1, 1024] f32
    w1_ref : [1024, 256] bf16   b1_ref : [1, 256]  f32
    w2_ref : [256, 128]  bf16   b2_ref : [1, 1]    f32 (SMEM scalar)
    out_ref: [TB, 128]   f32  (only column 0 is meaningful)
    """
    h = jnp.dot(x_ref[...].astype(jnp.bfloat16), w0_ref[...],
                preferred_element_type=jnp.float32) + b0_ref[...]
    h = jnp.maximum(h, 0.0)

    h = jnp.dot(h.astype(jnp.bfloat16), w1_ref[...],
                preferred_element_type=jnp.float32) + b1_ref[...]
    h = jnp.maximum(h, 0.0)

    logits = jnp.dot(h.astype(jnp.bfloat16), w2_ref[...],
                     preferred_element_type=jnp.float32) + b2_ref[0, 0]
    out_ref[...] = jax.nn.sigmoid(logits)


# -----------------------------------------------------------------------------
# Wrapper
# -----------------------------------------------------------------------------
@functools.partial(jax.jit, static_argnames=())
def prior_discriminator_256(params, x):
    B = x.shape[0]
    tb = min(128, _round_up(B, 8))          # rows per grid step (sublane mult.)
    bp = _round_up(B, tb)                    # padded batch
    x_p = jnp.zeros((bp, D_IN), jnp.float32).at[:B].set(x.astype(jnp.float32))

    out = pl.pallas_call(
        _prior_kernel,
        out_shape=jax.ShapeDtypeStruct((bp, D_OUT_P), jnp.float32),
        grid_spec=pltpu.PrefetchScalarGridSpec(
            num_scalar_prefetch=0,
            grid=(bp // tb,),
            in_specs=[
                pl.BlockSpec((tb, D_IN), lambda i: (i, 0)),        # x tile
                pl.BlockSpec((D_IN, H0_P), lambda i: (0, 0)),      # w0 (resident)
                pl.BlockSpec((1, H0_P), lambda i: (0, 0)),         # b0
                pl.BlockSpec((H0_P, H1_P), lambda i: (0, 0)),      # w1 (resident)
                pl.BlockSpec((1, H1_P), lambda i: (0, 0)),         # b1
                pl.BlockSpec((H1_P, D_OUT_P), lambda i: (0, 0)),   # w2 (resident)
                pl.BlockSpec((1, 1), lambda i: (0, 0),             # b2 scalar
                             memory_space=pltpu.MemorySpace.SMEM),
            ],
            out_specs=pl.BlockSpec((tb, D_OUT_P), lambda i: (i, 0)),
        ),
        compiler_params=pltpu.CompilerParams(
            dimension_semantics=("parallel",)),
    )(x_p, params["w0"], params["b0"], params["w1"], params["b1"],
      params["w2"], params["b2"])

    return out[:B, :D_OUT]                   # strip batch / lane padding


# -----------------------------------------------------------------------------
# Parameter init (PyTorch Linear-style uniform), pre-transposed + zero-padded.
# -----------------------------------------------------------------------------
def init_params(key):
    def linear(k, fin, fout, fin_p, fout_p):
        kw, kb = jax.random.split(k)
        bound = 1.0 / (fin ** 0.5)
        w = jax.random.uniform(kw, (fin, fout), jnp.float32, -bound, bound)
        b = jax.random.uniform(kb, (fout,), jnp.float32, -bound, bound)
        w_p = jnp.zeros((fin_p, fout_p), jnp.float32).at[:fin, :fout].set(w)
        b_p = jnp.zeros((1, fout_p), jnp.float32).at[0, :fout].set(b)
        return w_p.astype(jnp.bfloat16), b_p

    k0, k1, k2 = jax.random.split(key, 3)
    w0, b0 = linear(k0, D_IN, H0, D_IN, H0_P)
    w1, b1 = linear(k1, H0, H1, H0_P, H1_P)
    w2, b2_full = linear(k2, H1, D_OUT, H1_P, D_OUT_P)
    b2 = b2_full[:, :1]                      # (1,1) f32 scalar bias (SMEM)
    return {"w0": w0, "b0": b0, "w1": w1, "b1": b1, "w2": w2, "b2": b2}


# -----------------------------------------------------------------------------
# Pure-JAX reference (same bf16-weight / f32-accumulate recipe) for a sanity check.
# -----------------------------------------------------------------------------
def _reference(params, x):
    def mm(a, w):
        return jax.lax.dot(a.astype(jnp.bfloat16), w,
                           preferred_element_type=jnp.float32)
    h = jnp.maximum(mm(x, params["w0"]) + params["b0"], 0.0)
    h = jnp.maximum(mm(h, params["w1"]) + params["b1"], 0.0)
    logits = mm(h, params["w2"])[:, :D_OUT] + params["b2"]
    return jax.nn.sigmoid(logits)


# -----------------------------------------------------------------------------
if __name__ == "__main__":
    key = jax.random.PRNGKey(0)
    k_x, k_p = jax.random.split(key)

    B = 8                                   # small example batch
    x = jax.random.normal(k_x, (B, D_IN), jnp.float32)
    params = init_params(k_p)

    out = prior_discriminator_256(params, x)
    out = jax.block_until_ready(out)

    assert out.shape == (B, 1)
    assert bool(jnp.all(jnp.isfinite(out)))
    assert bool(jnp.all((out > 0.0) & (out < 1.0)))

    ref = _reference(params, x)
    assert bool(jnp.allclose(out, ref, atol=2e-3, rtol=2e-3))

    print("KERNEL_OK")
</pallas_src>

<mosaic_0001>
module attributes {stable_mosaic.version = 11 : i64} {
  func.func @_prior_kernel(%arg0: i32, %arg1: memref<8x256xf32, #tpu.memory_space<vmem>>, %arg2: memref<256x1024xbf16, #tpu.memory_space<vmem>>, %arg3: memref<1x1024xf32, #tpu.memory_space<vmem>>, %arg4: memref<1024x256xbf16, #tpu.memory_space<vmem>>, %arg5: memref<1x256xf32, #tpu.memory_space<vmem>>, %arg6: memref<256x128xbf16, #tpu.memory_space<vmem>>, %arg7: memref<1x1xf32, #tpu.memory_space<smem>>, %arg8: memref<8x128xf32, #tpu.memory_space<vmem>>) attributes {dimension_semantics = [#tpu.dimension_semantics<parallel>], iteration_bounds = array<i64: 1>, scalar_prefetch = 0 : i64, scratch_operands = 0 : i64, tpu.core_type = #tpu.core_type<tc>, window_params = [{transform_indices = @transform_0, window_bounds = array<i64: 8, 256>}, {pipeline_mode = #tpu.pipeline_mode<synchronous>, transform_indices = @transform_1, window_bounds = array<i64: 256, 1024>}, {pipeline_mode = #tpu.pipeline_mode<synchronous>, transform_indices = @transform_2, window_bounds = array<i64: 1, 1024>}, {pipeline_mode = #tpu.pipeline_mode<synchronous>, transform_indices = @transform_3, window_bounds = array<i64: 1024, 256>}, {pipeline_mode = #tpu.pipeline_mode<synchronous>, transform_indices = @transform_4, window_bounds = array<i64: 1, 256>}, {pipeline_mode = #tpu.pipeline_mode<synchronous>, transform_indices = @transform_5, window_bounds = array<i64: 256, 128>}, {transform_indices = @transform_6, window_bounds = array<i64: 1, 1>}, {transform_indices = @transform_7, window_bounds = array<i64: 8, 128>}]} {
    %c0 = arith.constant 0 : index
    %c0_0 = arith.constant 0 : index
    %0 = vector.load %arg1[%c0, %c0_0] : memref<8x256xf32, #tpu.memory_space<vmem>>, vector<8x256xf32>
    %1 = arith.truncf %0 : vector<8x256xf32> to vector<8x256xbf16>
    %c0_1 = arith.constant 0 : index
    %c0_2 = arith.constant 0 : index
    %2 = vector.load %arg2[%c0_1, %c0_2] : memref<256x1024xbf16, #tpu.memory_space<vmem>>, vector<256x1024xbf16>
    %cst = arith.constant dense<0.000000e+00> : vector<8x1024xf32>
    %3 = tpu.matmul %1, %2, %cst {dimension_numbers = #tpu.dot_dimension_numbers<[1], [0], [0], [1], [0, 0, 1, 1], [], []>} : vector<8x256xbf16>, vector<256x1024xbf16>, vector<8x1024xf32> -> vector<8x1024xf32>
    %c0_3 = arith.constant 0 : index
    %c0_4 = arith.constant 0 : index
    %4 = vector.load %arg3[%c0_3, %c0_4] : memref<1x1024xf32, #tpu.memory_space<vmem>>, vector<1x1024xf32>
    %5 = vector.broadcast %4 : vector<1x1024xf32> to vector<8x1024xf32>
    %6 = arith.addf %3, %5 : vector<8x1024xf32>
    %cst_5 = arith.constant 0.000000e+00 : f32
    %7 = vector.broadcast %cst_5 : f32 to vector<8x1024xf32>
    %8 = arith.maximumf %6, %7 : vector<8x1024xf32>
    %9 = arith.truncf %8 : vector<8x1024xf32> to vector<8x1024xbf16>
    %c0_6 = arith.constant 0 : index
    %c0_7 = arith.constant 0 : index
    %10 = vector.load %arg4[%c0_6, %c0_7] : memref<1024x256xbf16, #tpu.memory_space<vmem>>, vector<1024x256xbf16>
    %cst_8 = arith.constant dense<0.000000e+00> : vector<8x256xf32>
    %11 = tpu.matmul %9, %10, %cst_8 {dimension_numbers = #tpu.dot_dimension_numbers<[1], [0], [0], [1], [0, 0, 1, 1], [], []>} : vector<8x1024xbf16>, vector<1024x256xbf16>, vector<8x256xf32> -> vector<8x256xf32>
    %c0_9 = arith.constant 0 : index
    %c0_10 = arith.constant 0 : index
    %12 = vector.load %arg5[%c0_9, %c0_10] : memref<1x256xf32, #tpu.memory_space<vmem>>, vector<1x256xf32>
    %13 = vector.broadcast %12 : vector<1x256xf32> to vector<8x256xf32>
    %14 = arith.addf %11, %13 : vector<8x256xf32>
    %cst_11 = arith.constant 0.000000e+00 : f32
    %15 = vector.broadcast %cst_11 : f32 to vector<8x256xf32>
    %16 = arith.maximumf %14, %15 : vector<8x256xf32>
    %17 = arith.truncf %16 : vector<8x256xf32> to vector<8x256xbf16>
    %c0_12 = arith.constant 0 : index
    %c0_13 = arith.constant 0 : index
    %18 = vector.load %arg6[%c0_12, %c0_13] : memref<256x128xbf16, #tpu.memory_space<vmem>>, vector<256x128xbf16>
    %cst_14 = arith.constant dense<0.000000e+00> : vector<8x128xf32>
    %19 = tpu.matmul %17, %18, %cst_14 {dimension_numbers = #tpu.dot_dimension_numbers<[1], [0], [0], [1], [0, 0, 1, 1], [], []>} : vector<8x256xbf16>, vector<256x128xbf16>, vector<8x128xf32> -> vector<8x128xf32>
    %c0_15 = arith.constant 0 : index
    %c0_16 = arith.constant 0 : index
    %20 = memref.load %arg7[%c0_15, %c0_16] : memref<1x1xf32, #tpu.memory_space<smem>>
    %21 = vector.broadcast %20 : f32 to vector<8x128xf32>
    %22 = arith.addf %19, %21 : vector<8x128xf32>
    %23 = arith.negf %22 : vector<8x128xf32>
    %24 = math.exp %23 : vector<8x128xf32>
    %cst_17 = arith.constant 1.000000e+00 : f32
    %25 = vector.broadcast %cst_17 : f32 to vector<8x128xf32>
    %26 = arith.addf %25, %24 : vector<8x128xf32>
    %27 = arith.divf %25, %26 : vector<8x128xf32>
    %c0_18 = arith.constant 0 : index
    %c0_19 = arith.constant 0 : index
    %28 = vector.load %arg8[%c0_18, %c0_19] : memref<8x128xf32, #tpu.memory_space<vmem>>, vector<8x128xf32>
    tpu.vector_store %arg8[%c0_18, %c0_19], %27 {strides = array<i32>} : memref<8x128xf32, #tpu.memory_space<vmem>>, vector<8x128xf32>,
    return
  }
  func.func @transform_0(%arg0: i32) -> (i32, i32) {
    %c0_i32 = arith.constant 0 : i32
    %c0_i32_0 = arith.constant 0 : i32
    return %arg0, %c0_i32 : i32, i32
  }
  func.func @transform_1(%arg0: i32) -> (i32, i32) {
    %c0_i32 = arith.constant 0 : i32
    %c0_i32_0 = arith.constant 0 : i32
    %c0_i32_1 = arith.constant 0 : i32
    return %c0_i32, %c0_i32_0 : i32, i32
  }
  func.func @transform_2(%arg0: i32) -> (i32, i32) {
    %c0_i32 = arith.constant 0 : i32
    %c0_i32_0 = arith.constant 0 : i32
    %c0_i32_1 = arith.constant 0 : i32
    return %c0_i32, %c0_i32_0 : i32, i32
  }
  func.func @transform_3(%arg0: i32) -> (i32, i32) {
    %c0_i32 = arith.constant 0 : i32
    %c0_i32_0 = arith.constant 0 : i32
    %c0_i32_1 = arith.constant 0 : i32
    return %c0_i32, %c0_i32_0 : i32, i32
  }
  func.func @transform_4(%arg0: i32) -> (i32, i32) {
    %c0_i32 = arith.constant 0 : i32
    %c0_i32_0 = arith.constant 0 : i32
    %c0_i32_1 = arith.constant 0 : i32
    return %c0_i32, %c0_i32_0 : i32, i32
  }
  func.func @transform_5(%arg0: i32) -> (i32, i32) {
    %c0_i32 = arith.constant 0 : i32
    %c0_i32_0 = arith.constant 0 : i32
    %c0_i32_1 = arith.constant 0 : i32
    return %c0_i32, %c0_i32_0 : i32, i32
  }
  func.func @transform_6(%arg0: i32) -> (i32, i32) {
    %c0_i32 = arith.constant 0 : i32
    %c0_i32_0 = arith.constant 0 : i32
    %c0_i32_1 = arith.constant 0 : i32
    return %c0_i32, %c0_i32_0 : i32, i32
  }
  func.func @transform_7(%arg0: i32) -> (i32, i32) {
    %c0_i32 = arith.constant 0 : i32
    %c0_i32_0 = arith.constant 0 : i32
    return %arg0, %c0_i32 : i32, i32
  }
}

</mosaic_0001>

<bundles_post_ra>
// kernel: prior_discriminator_256.1
= control target key start
LH: loop header
LB: loop body
LE: loop exit
PB: predicated region body
PF: predicated region fallthrough
CT: control target
= control target key end

     0   :  { %13 = vsyncpa [#allocation4], 0  ;;  %s3927_s0 = inlined_call_operand.hbm [shape: f32[8,256], index: 0, kind: input, shape index: {}]   ;;  %s3928_s1 = inlined_call_operand.hbm [shape: bf16[256,1024], index: 1, kind: input, shape index: {}]   ;;  %s3929_s2 = inlined_call_operand.hbm [shape: f32[1,1024], index: 2, kind: input, shape index: {}]   ;;  %s3930_s3 = inlined_call_operand.hbm [shape: bf16[1024,256], index: 3, kind: input, shape index: {}]   ;;  %s3931_s4 = inlined_call_operand.vmem [shape: f32[1,256], index: 4, kind: input, shape index: {}]   ;;  %s3932_s5 = inlined_call_operand.hbm [shape: bf16[256,128], index: 5, kind: input, shape index: {}]   ;;  %s3933_s6 = inlined_call_operand.<no memory space> [shape: f32[1,1], index: 6, kind: input, shape index: {}]   ;;  %s3934_s7 = inlined_call_operand.vmem [shape: f32[8,128], index: 7, kind: output, shape index: {}]  }
   0x1   :  { %14 = vsyncpa [#allocation6], 0  ;;  %s31_s26 = sshll.u32 %s3928_s1, 4  ;;  %s32_s26 = int_to_ptr.hbm [resolvable:$true] %s31_s26 }
   0x2   :  { %15 = vsyncpa [#allocation9], 0  ;;  %s3786_s27 = smov [#allocation5]   ;;  %s55_s8 = sshll.u32 %s3930_s3, 4  ;;  %s56_s8 = int_to_ptr.hbm [resolvable:$true] %s55_s8 }
   0x3   :  { %s33_s28 = sshll.u32 %s3786_s27, 4  ;;  %s3787_s9 = smov 512   ;;  %s34_s28 = int_to_ptr.vmem [resolvable:$true] %s33_s28 }
   0x4   :  { %s3788_s10 = smov 32   ;;  %s3789_s11 = smov [#allocation8]  }
   0x5   :  { %39 = dma.hbm_to_vmem [thread:$0]  %s32_s26, 16384, %s34_s28, [#allocation6], %s3787_s9, %s3787_s9, %s3788_s10  }
   0x6   :  { %s57_s12 = sshll.u32 %s3789_s11, 4  ;;  %s3790_s13 = smov 128   ;;  %s58_s12 = int_to_ptr.vmem [resolvable:$true] %s57_s12 }
   0x7   :  { %s3791_s14 = smov 8   ;;  %s21_s16 = sshll.u32 %s3927_s0, 4  ;;  %s22_s16 = int_to_ptr.hbm [resolvable:$true] %s21_s16 }
   0x8   :  { %63 = dma.hbm_to_vmem [thread:$0]  %s56_s8, 16384, %s58_s12, [#allocation9], %s3790_s13, %s3790_s13, %s3791_s14  }
   0x9   :  { %s3792_s17 = smov [#allocation3]   ;;  %s45_s20 = sshll.u32 %s3929_s2, 4  ;;  %s46_s20 = int_to_ptr.hbm [resolvable:$true] %s45_s20 }
   0xa   :  { %s23_s18 = sshll.u32 %s3792_s17, 4  ;;  %s3793_s21 = smov [#allocation7]   ;;  %s24_s18 = int_to_ptr.vmem [resolvable:$true] %s23_s18 }
   0xb   :  { %26 = dma.hbm_to_vmem [thread:$0]  %s22_s16, 256, %s24_s18, [#allocation4]  }
   0xc   :  { %s47_s22 = sshll.u32 %s3793_s21, 4  ;;  %s70_s25 = sshll.u32 %s3932_s5, 4  ;;  %s48_s22 = int_to_ptr.vmem [resolvable:$true] %s47_s22  ;;  %s71_s25 = int_to_ptr.hbm [resolvable:$true] %s70_s25 }
   0xd   :  { %50 = dma.hbm_to_vmem [thread:$0]  %s46_s20, 128, %s48_s22, [#allocation6]  }
   0xe   :  { %s3794_s0 = smov [#allocation10]   ;;  %s3795_s27 = smov 64  }
   0xf   :  { %s72_s26 = sshll.u32 %s3794_s0, 4  ;;  %s3796_s28 = smov 4   ;;  %s73_s26 = int_to_ptr.vmem [resolvable:$true] %s72_s26 }
  0x10   :  { %78 = dma.hbm_to_vmem [thread:$0]  %s71_s25, 2048, %s73_s26, [#allocation9], %s3795_s27, %s3795_s27, %s3796_s28  }
  0x11   :  { %3780 = dma.done.wait [#allocation4], 256  }
  0x12   :  { %3781 = vsyncadd [#allocation4], 4294967040 }
  0x13   :  { %3782 = dma.done.wait [#allocation6], 16512  }
  0x14   :  { %3783 = vsyncadd [#allocation6], 4294950784 }
  0x15   :  { %3784 = dma.done.wait [#allocation9], 18432  }
  0x16   :  { %3785 = vsyncadd [#allocation9], 4294948864  ;;  %v2510_v0 = vld [vmem:[#allocation5 + $0x1c0] sm:$0xf]  ;;  %v3429_v5 = vld [vmem:[#allocation5 + $0x1c4] sm:$0xf] }
  0x17   :  { %v3433_v1 = vld [vmem:[#allocation5 + $0x1dc] sm:$0xf0]  ;;  %v2512_v6 = vld [vmem:[#allocation5 + $0x1e0] sm:$0xf0] }
  0x18   :  { %v2766_v2 = vld [vmem:[#allocation5 + $0x3c0] sm:$0xf]  ;;  %v2511_v3 = vor.u32 %v3433_v1, %v2510_v0  ;;  %v2515_v8 = vor.u32 %v3429_v5, %v2512_v6  ;;  %v3493_v9 = vld [vmem:[#allocation5 + $0x3c4] sm:$0xf] }
  0x19   :  { %v3497_v4 = vld [vmem:[#allocation5 + $0x3dc] sm:$0xf0]  ;;  %v2768_v10 = vld [vmem:[#allocation5 + $0x3e0] sm:$0xf0] }
  0x1a   :  { %v2767_v7 = vor.u32 %v3497_v4, %v2766_v2  ;;  %v2478_v11 = vld [vmem:[#allocation5 + $0x180] sm:$0xf]  ;;  %891 = vmatpush.bf16.msra.mxu0 %v2511_v3  ;;  %v2771_v12 = vor.u32 %v3493_v9, %v2768_v10  ;;  %917 = vmatpush.bf16.msra.mxu2 %v2515_v8  ;;  %v3421_v18 = vld [vmem:[#allocation5 + $0x184] sm:$0xf] }
  0x1b   :  { %v3425_v13 = vld [vmem:[#allocation5 + $0x19c] sm:$0xf0]  ;;  %v2480_v19 = vld [vmem:[#allocation5 + $0x1a0] sm:$0xf0] }
  0x1c   :  { %v2734_v14 = vld [vmem:[#allocation5 + $0x380] sm:$0xf]  ;;  %904 = vmatpush.bf16.msra.mxu1 %v2767_v7  ;;  %v2479_v16 = vor.u32 %v3425_v13, %v2478_v11  ;;  %v3485_v20 = vld [vmem:[#allocation5 + $0x384] sm:$0xf]  ;;  %930 = vmatpush.bf16.msra.mxu3 %v2771_v12  ;;  %v2483_v21 = vor.u32 %v3421_v18, %v2480_v19 }
  0x1d   :  { %v3489_v15 = vld [vmem:[#allocation5 + $0x39c] sm:$0xf0]  ;;  %v2736_v22 = vld [vmem:[#allocation5 + $0x3a0] sm:$0xf0] }
  0x1e   :  { %v2735_v17 = vor.u32 %v3489_v15, %v2734_v14  ;;  %v2446_v23 = vld [vmem:[#allocation5 + $0x140] sm:$0xf]  ;;  %v2739_v25 = vor.u32 %v3485_v20, %v2736_v22  ;;  %v3413_v28 = vld [vmem:[#allocation5 + $0x144] sm:$0xf]  ;;  %892 = vmatpush.bf16.msra.mxu0 %v2479_v16  ;;  %918 = vmatpush.bf16.msra.mxu2 %v2483_v21 }
  0x1f   :  { %v3417_v24 = vld [vmem:[#allocation5 + $0x15c] sm:$0xf0]  ;;  %v2448_v30 = vld [vmem:[#allocation5 + $0x160] sm:$0xf0] }
  0x20   :  { %v2702_v26 = vld [vmem:[#allocation5 + $0x340] sm:$0xf]  ;;  %v2447_v29 = vor.u32 %v3417_v24, %v2446_v23  ;;  %v3477_v31 = vld [vmem:[#allocation5 + $0x344] sm:$0xf]  ;;  %905 = vmatpush.bf16.msra.mxu1 %v2735_v17  ;;  %v2451_v34 = vor.u32 %v3413_v28, %v2448_v30  ;;  %931 = vmatpush.bf16.msra.mxu3 %v2739_v25  ;;  %v2518_v28 = vld [vmem:[#allocation5 + $0x1c8] sm:$0xf] }
  0x21   :  { %v3481_v27 = vld [vmem:[#allocation5 + $0x35c] sm:$0xf0]  ;;  %v2704_v32 = vld [vmem:[#allocation5 + $0x360] sm:$0xf0]  ;;  %v2774_v30 = vld [vmem:[#allocation5 + $0x3c8] sm:$0xf] }
  0x22   :  { %v2703_v33 = vor.u32 %v3481_v27, %v2702_v26  ;;  %v2414_v35 = vld [vmem:[#allocation5 + $0x100] sm:$0xf]  ;;  %v2707_v38 = vor.u32 %v3477_v31, %v2704_v32  ;;  %v3405_v40 = vld [vmem:[#allocation5 + $0x104] sm:$0xf]  ;;  %893 = vmatpush.bf16.msra.mxu0 %v2447_v29  ;;  %919 = vmatpush.bf16.msra.mxu2 %v2451_v34  ;;  %v3434_v29 = vld [vmem:[#allocation5 + $0x1e4] sm:$0xf0] }
  0x23   :  { %v3409_v36 = vld [vmem:[#allocation5 + $0x11c] sm:$0xf0]  ;;  %v2416_v41 = vld [vmem:[#allocation5 + $0x120] sm:$0xf0]  ;;  %v3498_v32 = vld [vmem:[#allocation5 + $0x3e4] sm:$0xf0] }
  0x24   :  { %v2670_v37 = vld [vmem:[#allocation5 + $0x300] sm:$0xf]  ;;  %v3469_v42 = vld [vmem:[#allocation5 + $0x304] sm:$0xf]  ;;  %v2415_v44 = vor.u32 %v3409_v36, %v2414_v35  ;;  %906 = vmatpush.bf16.msra.mxu1 %v2703_v33  ;;  %v2419_v46 = vor.u32 %v3405_v40, %v2416_v41  ;;  %932 = vmatpush.bf16.msra.mxu3 %v2707_v38  ;;  %v3430_v33 = vld [vmem:[#allocation5 + $0x1cc] sm:$0xf]  ;;  %v2519_v40 = vor.u32 %v3434_v29, %v2518_v28 }
  0x25   :  { %v3473_v39 = vld [vmem:[#allocation5 + $0x31c] sm:$0xf0]  ;;  %v2672_v43 = vld [vmem:[#allocation5 + $0x320] sm:$0xf0]  ;;  %v2520_v34 = vld [vmem:[#allocation5 + $0x1e8] sm:$0xf0]  ;;  %v2775_v41 = vor.u32 %v3498_v32, %v2774_v30 }
  0x26   :  { %v2671_v45 = vor.u32 %v3473_v39, %v2670_v37  ;;  %v2382_v47 = vld [vmem:[#allocation5 + $0xc0] sm:$0xf]  ;;  %v2675_v50 = vor.u32 %v3469_v42, %v2672_v43  ;;  %v3397_v52 = vld [vmem:[#allocation5 + $0xc4] sm:$0xf]  ;;  %894 = vmatpush.bf16.msra.mxu0 %v2415_v44  ;;  %920 = vmatpush.bf16.msra.mxu2 %v2419_v46  ;;  %v3494_v37 = vld [vmem:[#allocation5 + $0x3cc] sm:$0xf]  ;;  %v2523_v42 = vor.u32 %v3430_v33, %v2520_v34 }
  0x27   :  { %v3401_v48 = vld [vmem:[#allocation5 + $0xdc] sm:$0xf0]  ;;  %v2384_v53 = vld [vmem:[#allocation5 + $0xe0] sm:$0xf0]  ;;  %v2776_v38 = vld [vmem:[#allocation5 + $0x3e8] sm:$0xf0] }
  0x28   :  { %v2638_v49 = vld [vmem:[#allocation5 + $0x2c0] sm:$0xf]  ;;  %v3461_v54 = vld [vmem:[#allocation5 + $0x2c4] sm:$0xf]  ;;  %v2383_v56 = vor.u32 %v3401_v48, %v2382_v47  ;;  %907 = vmatpush.bf16.msra.mxu1 %v2671_v45  ;;  %v2387_v58 = vor.u32 %v3397_v52, %v2384_v53  ;;  %933 = vmatpush.bf16.msra.mxu3 %v2675_v50  ;;  %v2486_v43 = vld [vmem:[#allocation5 + $0x188] sm:$0xf]  ;;  %v2779_v46 = vor.u32 %v3494_v37, %v2776_v38 }
  0x29   :  { %v3465_v51 = vld [vmem:[#allocation5 + $0x2dc] sm:$0xf0]  ;;  %v2640_v55 = vld [vmem:[#allocation5 + $0x2e0] sm:$0xf0]  ;;  %v3426_v44 = vld [vmem:[#allocation5 + $0x1a4] sm:$0xf0] }
  0x2a   :  { %v2639_v57 = vor.u32 %v3465_v51, %v2638_v49  ;;  %v2350_v59 = vld [vmem:[#allocation5 + $0x80] sm:$0xf]  ;;  %v2643_v62 = vor.u32 %v3461_v54, %v2640_v55  ;;  %v3389_v0 = vld [vmem:[#allocation5 + $0x84] sm:$0xf]  ;;  %895 = vmatpush.bf16.msra.mxu0 %v2383_v56  ;;  %921 = vmatpush.bf16.msra.mxu2 %v2387_v58  ;;  %v2742_v45 = vld [vmem:[#allocation5 + $0x388] sm:$0xf]  ;;  %v2487_v53 = vor.u32 %v3426_v44, %v2486_v43 }
  0x2b   :  { %v3393_v60 = vld [vmem:[#allocation5 + $0x9c] sm:$0xf0]  ;;  %v2352_v1 = vld [vmem:[#allocation5 + $0xa0] sm:$0xf0]  ;;  %v3490_v47 = vld [vmem:[#allocation5 + $0x3a4] sm:$0xf0] }
  0x2c   :  { %v2606_v61 = vld [vmem:[#allocation5 + $0x280] sm:$0xf]  ;;  %v3453_v2 = vld [vmem:[#allocation5 + $0x284] sm:$0xf]  ;;  %v2351_v4 = vor.u32 %v3393_v60, %v2350_v59  ;;  %908 = vmatpush.bf16.msra.mxu1 %v2639_v57  ;;  %v2355_v6 = vor.u32 %v3389_v0, %v2352_v1  ;;  %934 = vmatpush.bf16.msra.mxu3 %v2643_v62  ;;  %v3422_v48 = vld [vmem:[#allocation5 + $0x18c] sm:$0xf]  ;;  %v2743_v56 = vor.u32 %v3490_v47, %v2742_v45 }
  0x2d   :  { %v3457_v63 = vld [vmem:[#allocation5 + $0x29c] sm:$0xf0]  ;;  %v2608_v3 = vld [vmem:[#allocation5 + $0x2a0] sm:$0xf0]  ;;  %v2488_v49 = vld [vmem:[#allocation5 + $0x1a8] sm:$0xf0] }
  0x2e   :  { %v2607_v5 = vor.u32 %v3457_v63, %v2606_v61  ;;  %v2318_v7 = vld [vmem:[#allocation5 + $0x40] sm:$0xf]  ;;  %v2611_v10 = vor.u32 %v3453_v2, %v2608_v3  ;;  %v3381_v12 = vld [vmem:[#allocation5 + $0x44] sm:$0xf]  ;;  %896 = vmatpush.bf16.msra.mxu0 %v2351_v4  ;;  %922 = vmatpush.bf16.msra.mxu2 %v2355_v6  ;;  %v3486_v50 = vld [vmem:[#allocation5 + $0x38c] sm:$0xf]  ;;  %v2491_v57 = vor.u32 %v3422_v48, %v2488_v49 }
  0x2f   :  { %v3385_v8 = vld [vmem:[#allocation5 + $0x5c] sm:$0xf0]  ;;  %v2320_v13 = vld [vmem:[#allocation5 + $0x60] sm:$0xf0]  ;;  %v2744_v51 = vld [vmem:[#allocation5 + $0x3a8] sm:$0xf0] }
  0x30   :  { %v2574_v9 = vld [vmem:[#allocation5 + $0x240] sm:$0xf]  ;;  %v3445_v14 = vld [vmem:[#allocation5 + $0x244] sm:$0xf]  ;;  %v2319_v16 = vor.u32 %v3385_v8, %v2318_v7  ;;  %909 = vmatpush.bf16.msra.mxu1 %v2607_v5  ;;  %v2323_v20 = vor.u32 %v3381_v12, %v2320_v13  ;;  %935 = vmatpush.bf16.msra.mxu3 %v2611_v10  ;;  %v101_v52 = vld [vmem:[#allocation3] sm:$0xff]  ;;  %v2747_v61 = vor.u32 %v3486_v50, %v2744_v51 }
  0x31   :  { %v3449_v11 = vld [vmem:[#allocation5 + $0x25c] sm:$0xf0]  ;;  %v2576_v15 = vld [vmem:[#allocation5 + $0x260] sm:$0xf0]  ;;  %v2454_v54 = vld [vmem:[#allocation5 + $0x148] sm:$0xf]  ;;  %v3852_v55 = vpack.c.bf16 %v101_v52, %v101_v52 }
  0x32   :  { %v2286_v17 = vld [vmem:[#allocation5] sm:$0xf]  ;;  %v2575_v19 = vor.u32 %v3449_v11, %v2574_v9  ;;  %v3373_v23 = vld [vmem:[#allocation5 + $0x4] sm:$0xf]  ;;  %v2579_v24 = vor.u32 %v3445_v14, %v2576_v15  ;;  %897 = vmatpush.bf16.msra.mxu0 %v2319_v16  ;;  %923 = vmatpush.bf16.msra.mxu2 %v2323_v20  ;;  %v3418_v58 = vld [vmem:[#allocation5 + $0x164] sm:$0xf0] }
  0x33   :  { %v3377_v18 = vld [vmem:[#allocation5 + $0x1c] sm:$0xf0]  ;;  %v2288_v25 = vld [vmem:[#allocation5 + $0x20] sm:$0xf0]  ;;  %v2710_v59 = vld [vmem:[#allocation5 + $0x348] sm:$0xf]  ;;  %v2455_v4 = vor.u32 %v3418_v58, %v2454_v54 }
  0x34   :  { %v2542_v21 = vld [vmem:[#allocation5 + $0x200] sm:$0xf]  ;;  %v3437_v26 = vld [vmem:[#allocation5 + $0x204] sm:$0xf]  ;;  %v2287_v31 = vor.u32 %v3377_v18, %v2286_v17  ;;  %910 = vmatpush.bf16.msra.mxu1 %v2575_v19  ;;  %v2291_v36 = vor.u32 %v3373_v23, %v2288_v25  ;;  %936 = vmatpush.bf16.msra.mxu3 %v2579_v24  ;;  %v3482_v60 = vld [vmem:[#allocation5 + $0x364] sm:$0xf0] }
  0x35   :  { %v3441_v22 = vld [vmem:[#allocation5 + $0x21c] sm:$0xf0]  ;;  %v2544_v27 = vld [vmem:[#allocation5 + $0x220] sm:$0xf0]  ;;  %v3414_v62 = vld [vmem:[#allocation5 + $0x14c] sm:$0xf]  ;;  %v2711_v5 = vor.u32 %v3482_v60, %v2710_v59 }
  0x36   :  { %v2543_v35 = vor.u32 %v3441_v22, %v2542_v21  ;;  %v2547_v39 = vor.u32 %v3437_v26, %v2544_v27  ;;  %898 = vmatpush.bf16.msra.mxu0 %v2287_v31  ;;  %924 = vmatpush.bf16.msra.mxu2 %v2291_v36  ;;  %v2456_v63 = vld [vmem:[#allocation5 + $0x168] sm:$0xf0]  ;;  %v102_v0 = vld [vmem:[#allocation3 + $0x8] sm:$0xff]  ;;  %v2422_v7 = vld [vmem:[#allocation5 + $0x108] sm:$0xf] }
  0x37   :  { %v3478_v1 = vld [vmem:[#allocation5 + $0x34c] sm:$0xf]  ;;  %v3856_v3 = vpack.c.bf16 %v102_v0, %v102_v0  ;;  %v2459_v6 = vor.u32 %v3414_v62, %v2456_v63  ;;  %v3410_v8 = vld [vmem:[#allocation5 + $0x124] sm:$0xf0] }
  0x38   :  { %911 = vmatpush.bf16.msra.mxu1 %v2543_v35  ;;  %937 = vmatpush.bf16.msra.mxu3 %v2547_v39  ;;  %v2712_v2 = vld [vmem:[#allocation5 + $0x368] sm:$0xf0]  ;;  %v2678_v9 = vld [vmem:[#allocation5 + $0x308] sm:$0xf]  ;;  %v2423_v16 = vor.u32 %v3410_v8, %v2422_v7  ;;  %v3431_v7 = vld [vmem:[#allocation5 + $0x1d4] sm:$0xf] }
  0x39   :  { %899 = vmatmul.bf16.vlgmr.msra.gmra.mxu0 %v3852_v55  ;;  %925 = vmatmul.bf16.vlgmr.msra.gmra.mxu2 %v3852_v55  ;;  %v2715_v10 = vor.u32 %v3478_v1, %v2712_v2  ;;  %v3474_v11 = vld [vmem:[#allocation5 + $0x324] sm:$0xf0]  ;;  %v3406_v12 = vld [vmem:[#allocation5 + $0x10c] sm:$0xf]  ;;  %v2526_v1 = vld [vmem:[#allocation5 + $0x1d0] sm:$0xf] }
  0x3a   :  { %943 = vmatpush.bf16.msrb.mxu0 %v2519_v40  ;;  %969 = vmatpush.bf16.msrb.mxu2 %v2523_v42  ;;  %v2424_v13 = vld [vmem:[#allocation5 + $0x128] sm:$0xf0]  ;;  %v2679_v17 = vor.u32 %v3474_v11, %v2678_v9  ;;  %v2390_v19 = vld [vmem:[#allocation5 + $0xc8] sm:$0xf]  ;;  %v3435_v2 = vld [vmem:[#allocation5 + $0x1ec] sm:$0xf0] }
  0x3b   :  { %912 = vmatmul.bf16.vlgmr.msra.gmra.mxu1 %v3856_v3  ;;  %v3470_v14 = vld [vmem:[#allocation5 + $0x30c] sm:$0xf]  ;;  %938 = vmatmul.bf16.vlgmr.msra.gmra.mxu3 %v3856_v3  ;;  %v2427_v18 = vor.u32 %v3406_v12, %v2424_v13  ;;  %v3402_v20 = vld [vmem:[#allocation5 + $0xe4] sm:$0xf0]  ;;  %v2528_v8 = vld [vmem:[#allocation5 + $0x1f0] sm:$0xf0] }
  0x3c   :  { %956 = vmatpush.bf16.msrb.mxu1 %v2775_v41  ;;  %982 = vmatpush.bf16.msrb.mxu3 %v2779_v46  ;;  %v2680_v15 = vld [vmem:[#allocation5 + $0x328] sm:$0xf0]  ;;  %v2646_v21 = vld [vmem:[#allocation5 + $0x2c8] sm:$0xf]  ;;  %v2391_v28 = vor.u32 %v3402_v20, %v2390_v19  ;;  %v3495_v11 = vld [vmem:[#allocation5 + $0x3d4] sm:$0xf] }
  0x3d   :  { %v2683_v22 = vor.u32 %v3470_v14, %v2680_v15  ;;  %v3466_v23 = vld [vmem:[#allocation5 + $0x2e4] sm:$0xf0]  ;;  %v3398_v24 = vld [vmem:[#allocation5 + $0xcc] sm:$0xf]  ;;  %v2784_v12 = vld [vmem:[#allocation5 + $0x3f0] sm:$0xf0]  ;;  %v2527_v14 = vor.u32 %v3435_v2, %v2526_v1 }
  0x3e   :  { %944 = vmatpush.bf16.msrb.mxu0 %v2487_v53  ;;  %970 = vmatpush.bf16.msrb.mxu2 %v2491_v57  ;;  %v2392_v25 = vld [vmem:[#allocation5 + $0xe8] sm:$0xf0]  ;;  %v2647_v29 = vor.u32 %v3466_v23, %v2646_v21  ;;  %v2358_v31 = vld [vmem:[#allocation5 + $0x88] sm:$0xf]  ;;  %v2750_v19 = vld [vmem:[#allocation5 + $0x390] sm:$0xf]  ;;  %v2787_v20 = vor.u32 %v3495_v11, %v2784_v12 }
  0x3f   :  { %v3462_v26 = vld [vmem:[#allocation5 + $0x2cc] sm:$0xf]  ;;  %v2395_v30 = vor.u32 %v3398_v24, %v2392_v25  ;;  %v3394_v32 = vld [vmem:[#allocation5 + $0xa4] sm:$0xf0]  ;;  %v3491_v21 = vld [vmem:[#allocation5 + $0x3ac] sm:$0xf0] }
  0x40   :  { %957 = vmatpush.bf16.msrb.mxu1 %v2743_v56  ;;  %983 = vmatpush.bf16.msrb.mxu3 %v2747_v61  ;;  %v2648_v27 = vld [vmem:[#allocation5 + $0x2e8] sm:$0xf0]  ;;  %v2614_v33 = vld [vmem:[#allocation5 + $0x288] sm:$0xf]  ;;  %v2359_v40 = vor.u32 %v3394_v32, %v2358_v31  ;;  %v2496_v23 = vld [vmem:[#allocation5 + $0x1b0] sm:$0xf0] }
  0x41   :  { %v2651_v34 = vor.u32 %v3462_v26, %v2648_v27  ;;  %v3458_v35 = vld [vmem:[#allocation5 + $0x2a4] sm:$0xf0]  ;;  %v3390_v36 = vld [vmem:[#allocation5 + $0x8c] sm:$0xf]  ;;  %v3487_v24 = vld [vmem:[#allocation5 + $0x394] sm:$0xf]  ;;  %v2751_v27 = vor.u32 %v3491_v21, %v2750_v19 }
  0x42   :  { %945 = vmatpush.bf16.msrb.mxu0 %v2455_v4  ;;  %971 = vmatpush.bf16.msrb.mxu2 %v2459_v6  ;;  %v2360_v37 = vld [vmem:[#allocation5 + $0xa8] sm:$0xf0]  ;;  %v2615_v41 = vor.u32 %v3458_v35, %v2614_v33  ;;  %v2326_v43 = vld [vmem:[#allocation5 + $0x48] sm:$0xf]  ;;  %v2782_v4 = vld [vmem:[#allocation5 + $0x3d0] sm:$0xf] }
  0x43   :  { %v3454_v38 = vld [vmem:[#allocation5 + $0x28c] sm:$0xf]  ;;  %v2363_v42 = vor.u32 %v3390_v36, %v2360_v37  ;;  %v3386_v44 = vld [vmem:[#allocation5 + $0x64] sm:$0xf0]  ;;  %v3499_v6 = vld [vmem:[#allocation5 + $0x3ec] sm:$0xf0] }
  0x44   :  { %958 = vmatpush.bf16.msrb.mxu1 %v2711_v5  ;;  %984 = vmatpush.bf16.msrb.mxu3 %v2715_v10  ;;  %v2616_v39 = vld [vmem:[#allocation5 + $0x2a8] sm:$0xf0]  ;;  %v2582_v45 = vld [vmem:[#allocation5 + $0x248] sm:$0xf]  ;;  %v2327_v52 = vor.u32 %v3386_v44, %v2326_v43  ;;  %v2783_v15 = vor.u32 %v3499_v6, %v2782_v4  ;;  %v2752_v25 = vld [vmem:[#allocation5 + $0x3b0] sm:$0xf0] }
  0x45   :  { %v2619_v46 = vor.u32 %v3454_v38, %v2616_v39  ;;  %v3450_v47 = vld [vmem:[#allocation5 + $0x264] sm:$0xf0]  ;;  %v3382_v48 = vld [vmem:[#allocation5 + $0x4c] sm:$0xf]  ;;  %v2718_v31 = vld [vmem:[#allocation5 + $0x350] sm:$0xf]  ;;  %v2755_v32 = vor.u32 %v3487_v24, %v2752_v25 }
  0x46   :  { %946 = vmatpush.bf16.msrb.mxu0 %v2423_v16  ;;  %972 = vmatpush.bf16.msrb.mxu2 %v2427_v18  ;;  %v2328_v49 = vld [vmem:[#allocation5 + $0x68] sm:$0xf0]  ;;  %v2294_v53 = vld [vmem:[#allocation5 + $0x8] sm:$0xf]  ;;  %v2583_v56 = vor.u32 %v3450_v47, %v2582_v45  ;;  %v2531_v16 = vor.u32 %v3431_v7, %v2528_v8  ;;  %v3427_v18 = vld [vmem:[#allocation5 + $0x1ac] sm:$0xf0] }
  0x47   :  { %v3446_v50 = vld [vmem:[#allocation5 + $0x24c] sm:$0xf]  ;;  %v3378_v54 = vld [vmem:[#allocation5 + $0x24] sm:$0xf0]  ;;  %v2331_v57 = vor.u32 %v3382_v48, %v2328_v49  ;;  %v3483_v33 = vld [vmem:[#allocation5 + $0x36c] sm:$0xf0] }
  0x48   :  { %959 = vmatpush.bf16.msrb.mxu1 %v2679_v17  ;;  %985 = vmatpush.bf16.msrb.mxu3 %v2683_v22  ;;  %v2584_v51 = vld [vmem:[#allocation5 + $0x268] sm:$0xf0]  ;;  %v2550_v58 = vld [vmem:[#allocation5 + $0x208] sm:$0xf]  ;;  %v2295_v5 = vor.u32 %v3378_v54, %v2294_v53  ;;  %v2494_v17 = vld [vmem:[#allocation5 + $0x190] sm:$0xf]  ;;  %v2719_v39 = vor.u32 %v3483_v33, %v2718_v31 }
  0x49   :  { %v3442_v59 = vld [vmem:[#allocation5 + $0x224] sm:$0xf0]  ;;  %v3374_v60 = vld [vmem:[#allocation5 + $0xc] sm:$0xf]  ;;  %v2587_v61 = vor.u32 %v3446_v50, %v2584_v51  ;;  %v3423_v22 = vld [vmem:[#allocation5 + $0x194] sm:$0xf]  ;;  %v2495_v26 = vor.u32 %v3427_v18, %v2494_v17 }
  0x4a   :  { %947 = vmatpush.bf16.msrb.mxu0 %v2391_v28  ;;  %973 = vmatpush.bf16.msrb.mxu2 %v2395_v30  ;;  %v2296_v62 = vld [vmem:[#allocation5 + $0x28] sm:$0xf0]  ;;  %v2551_v9 = vor.u32 %v3442_v59, %v2550_v58  ;;  %v2499_v28 = vor.u32 %v3423_v22, %v2496_v23  ;;  %v3419_v30 = vld [vmem:[#allocation5 + $0x16c] sm:$0xf0]  ;;  %v2464_v35 = vld [vmem:[#allocation5 + $0x170] sm:$0xf0] }
  0x4b   :  { %v3438_v63 = vld [vmem:[#allocation5 + $0x20c] sm:$0xf]  ;;  %v2299_v10 = vor.u32 %v3374_v60, %v2296_v62  ;;  %v3479_v36 = vld [vmem:[#allocation5 + $0x354] sm:$0xf]  ;;  %v2686_v43 = vld [vmem:[#allocation5 + $0x310] sm:$0xf] }
  0x4c   :  { %960 = vmatpush.bf16.msrb.mxu1 %v2647_v29  ;;  %986 = vmatpush.bf16.msrb.mxu3 %v2651_v34  ;;  %v2552_v0 = vld [vmem:[#allocation5 + $0x228] sm:$0xf0]  ;;  %v2462_v29 = vld [vmem:[#allocation5 + $0x150] sm:$0xf]  ;;  %v3415_v34 = vld [vmem:[#allocation5 + $0x154] sm:$0xf] }
  0x4d   :  { %v2555_v13 = vor.u32 %v3438_v63, %v2552_v0  ;;  %v2720_v37 = vld [vmem:[#allocation5 + $0x370] sm:$0xf0]  ;;  %v2463_v38 = vor.u32 %v3419_v30, %v2462_v29  ;;  %v3475_v45 = vld [vmem:[#allocation5 + $0x32c] sm:$0xf0] }
  0x4e   :  { %948 = vmatpush.bf16.msrb.mxu0 %v2359_v40  ;;  %974 = vmatpush.bf16.msrb.mxu2 %v2363_v42  ;;  %v2467_v40 = vor.u32 %v3415_v34, %v2464_v35  ;;  %v3411_v42 = vld [vmem:[#allocation5 + $0x12c] sm:$0xf0]  ;;  %v2723_v44 = vor.u32 %v3479_v36, %v2720_v37  ;;  %v2432_v47 = vld [vmem:[#allocation5 + $0x130] sm:$0xf0]  ;;  %v2687_v51 = vor.u32 %v3475_v45, %v2686_v43  ;;  %v2534_v36 = vld [vmem:[#allocation5 + $0x1d8] sm:$0xf] }
  0x4f   :  { %v3471_v48 = vld [vmem:[#allocation5 + $0x314] sm:$0xf]  ;;  %v2398_v53 = vld [vmem:[#allocation5 + $0xd0] sm:$0xf]  ;;  %v3436_v37 = vld [vmem:[#allocation5 + $0x1f4] sm:$0xf0] }
  0x50   :  { %961 = vmatpush.bf16.msrb.mxu1 %v2615_v41  ;;  %987 = vmatpush.bf16.msrb.mxu3 %v2619_v46  ;;  %v2430_v41 = vld [vmem:[#allocation5 + $0x110] sm:$0xf]  ;;  %v3407_v46 = vld [vmem:[#allocation5 + $0x114] sm:$0xf]  ;;  %v3496_v45 = vld [vmem:[#allocation5 + $0x3dc] sm:$0xf] }
  0x51   :  { %v2688_v49 = vld [vmem:[#allocation5 + $0x330] sm:$0xf0]  ;;  %v2431_v50 = vor.u32 %v3411_v42, %v2430_v41  ;;  %v3403_v54 = vld [vmem:[#allocation5 + $0xec] sm:$0xf0]  ;;  %v3432_v41 = vld [vmem:[#allocation5 + $0x1dc] sm:$0xf] }
  0x52   :  { %949 = vmatpush.bf16.msrb.mxu0 %v2327_v52  ;;  %975 = vmatpush.bf16.msrb.mxu2 %v2331_v57  ;;  %v2435_v52 = vor.u32 %v3407_v46, %v2432_v47  ;;  %v2691_v57 = vor.u32 %v3471_v48, %v2688_v49  ;;  %v3467_v58 = vld [vmem:[#allocation5 + $0x2ec] sm:$0xf0]  ;;  %v3399_v59 = vld [vmem:[#allocation5 + $0xd4] sm:$0xf]  ;;  %v2399_v63 = vor.u32 %v3403_v54, %v2398_v53  ;;  %v2536_v42 = vld [vmem:[#allocation5 + $0x1f8] sm:$0xf0] }
  0x53   :  { %v2400_v60 = vld [vmem:[#allocation5 + $0xf0] sm:$0xf0]  ;;  %v2366_v2 = vld [vmem:[#allocation5 + $0x90] sm:$0xf]  ;;  %v2792_v46 = vld [vmem:[#allocation5 + $0x3f8] sm:$0xf0]  ;;  %v2535_v48 = vor.u32 %v3436_v37, %v2534_v36 }
  0x54   :  { %962 = vmatpush.bf16.msrb.mxu1 %v2583_v56  ;;  %988 = vmatpush.bf16.msrb.mxu3 %v2587_v61  ;;  %v2654_v56 = vld [vmem:[#allocation5 + $0x2d0] sm:$0xf]  ;;  %v3463_v61 = vld [vmem:[#allocation5 + $0x2d4] sm:$0xf]  ;;  %v2403_v1 = vor.u32 %v3399_v59, %v2400_v60  ;;  %v2758_v53 = vld [vmem:[#allocation5 + $0x398] sm:$0xf]  ;;  %v2795_v54 = vor.u32 %v3496_v45, %v2792_v46 }
  0x55   :  { %v2656_v62 = vld [vmem:[#allocation5 + $0x2f0] sm:$0xf0]  ;;  %v2655_v0 = vor.u32 %v3467_v58, %v2654_v56  ;;  %v3395_v4 = vld [vmem:[#allocation5 + $0xac] sm:$0xf0]  ;;  %v3492_v56 = vld [vmem:[#allocation5 + $0x3b4] sm:$0xf0] }
  0x56   :  { %950 = vmatpush.bf16.msrb.mxu0 %v2295_v5  ;;  %976 = vmatpush.bf16.msrb.mxu2 %v2299_v10  ;;  %v2622_v5 = vld [vmem:[#allocation5 + $0x290] sm:$0xf]  ;;  %v2659_v6 = vor.u32 %v3463_v61, %v2656_v62  ;;  %v3391_v8 = vld [vmem:[#allocation5 + $0x94] sm:$0xf]  ;;  %v2367_v12 = vor.u32 %v3395_v4, %v2366_v2  ;;  %v2504_v58 = vld [vmem:[#allocation5 + $0x1b8] sm:$0xf0]  ;;  %v2759_v62 = vor.u32 %v3492_v56, %v2758_v53 }
  0x57   :  { %v3459_v7 = vld [vmem:[#allocation5 + $0x2ac] sm:$0xf0]  ;;  %v3455_v10 = vld [vmem:[#allocation5 + $0x294] sm:$0xf]  ;;  %v3488_v59 = vld [vmem:[#allocation5 + $0x39c] sm:$0xf] }
  0x58   :  { %963 = vmatpush.bf16.msrb.mxu1 %v2551_v9  ;;  %989 = vmatpush.bf16.msrb.mxu3 %v2555_v13  ;;  %v2368_v9 = vld [vmem:[#allocation5 + $0xb0] sm:$0xf0]  ;;  %v2623_v13 = vor.u32 %v3459_v7, %v2622_v5  ;;  %v2590_v17 = vld [vmem:[#allocation5 + $0x250] sm:$0xf]  ;;  %v2760_v60 = vld [vmem:[#allocation5 + $0x3b8] sm:$0xf0] }
  0x59   :  { %951 = vmatmul.bf16.vlgmr.msrb.gmra.mxu0 %v3852_v55  ;;  %977 = vmatmul.bf16.vlgmr.msrb.gmra.mxu2 %v3852_v55  ;;  %v2624_v11 = vld [vmem:[#allocation5 + $0x2b0] sm:$0xf0]  ;;  %v3451_v19 = vld [vmem:[#allocation5 + $0x26c] sm:$0xf0]  ;;  %v2726_v2 = vld [vmem:[#allocation5 + $0x358] sm:$0xf]  ;;  %v2763_v4 = vor.u32 %v3488_v59, %v2760_v60 }
  0x5a   :  { %995 = vmatpush.bf16.msra.mxu0 %v2527_v14  ;;  %1021 = vmatpush.bf16.msra.mxu2 %v2531_v16  ;;  %v2371_v14 = vor.u32 %v3391_v8, %v2368_v9  ;;  %v3387_v16 = vld [vmem:[#allocation5 + $0x6c] sm:$0xf0]  ;;  %v2627_v18 = vor.u32 %v3455_v10, %v2624_v11  ;;  %v2336_v21 = vld [vmem:[#allocation5 + $0x70] sm:$0xf0]  ;;  %v3484_v5 = vld [vmem:[#allocation5 + $0x374] sm:$0xf0] }
  0x5b   :  { %964 = vmatmul.bf16.vlgmr.msrb.gmra.mxu1 %v3856_v3  ;;  %990 = vmatmul.bf16.vlgmr.msrb.gmra.mxu3 %v3856_v3  ;;  %v3447_v22 = vld [vmem:[#allocation5 + $0x254] sm:$0xf]  ;;  %v2302_v25 = vld [vmem:[#allocation5 + $0x10] sm:$0xf]  ;;  %v2472_v7 = vld [vmem:[#allocation5 + $0x178] sm:$0xf0]  ;;  %v2727_v11 = vor.u32 %v3484_v5, %v2726_v2 }
  0x5c   :  { %1008 = vmatpush.bf16.msra.mxu1 %v2783_v15  ;;  %1034 = vmatpush.bf16.msra.mxu3 %v2787_v20  ;;  %v2334_v15 = vld [vmem:[#allocation5 + $0x50] sm:$0xf]  ;;  %v3383_v20 = vld [vmem:[#allocation5 + $0x54] sm:$0xf]  ;;  %v3480_v8 = vld [vmem:[#allocation5 + $0x35c] sm:$0xf] }
  0x5d   :  { %v2592_v23 = vld [vmem:[#allocation5 + $0x270] sm:$0xf0]  ;;  %v2335_v24 = vor.u32 %v3387_v16, %v2334_v15  ;;  %v2558_v29 = vld [vmem:[#allocation5 + $0x210] sm:$0xf]  ;;  %v2728_v9 = vld [vmem:[#allocation5 + $0x378] sm:$0xf0] }
  0x5e   :  { %996 = vmatpush.bf16.msra.mxu0 %v2495_v26  ;;  %1022 = vmatpush.bf16.msra.mxu2 %v2499_v28  ;;  %v3379_v26 = vld [vmem:[#allocation5 + $0x2c] sm:$0xf0]  ;;  %v2339_v28 = vor.u32 %v3383_v20, %v2336_v21  ;;  %v3375_v31 = vld [vmem:[#allocation5 + $0x14] sm:$0xf]  ;;  %v2694_v15 = vld [vmem:[#allocation5 + $0x318] sm:$0xf]  ;;  %v2731_v16 = vor.u32 %v3480_v8, %v2728_v9 }
  0x5f   :  { %v3443_v30 = vld [vmem:[#allocation5 + $0x22c] sm:$0xf0]  ;;  %v2304_v33 = vld [vmem:[#allocation5 + $0x30] sm:$0xf0]  ;;  %v3472_v20 = vld [vmem:[#allocation5 + $0x31c] sm:$0xf] }
  0x60   :  { %1009 = vmatpush.bf16.msra.mxu1 %v2751_v27  ;;  %1035 = vmatpush.bf16.msra.mxu3 %v2755_v32  ;;  %v2591_v27 = vor.u32 %v3451_v19, %v2590_v17  ;;  %v2595_v32 = vor.u32 %v3447_v22, %v2592_v23  ;;  %v3439_v34 = vld [vmem:[#allocation5 + $0x214] sm:$0xf]  ;;  %v2559_v43 = vor.u32 %v3443_v30, %v2558_v29  ;;  %v3476_v17 = vld [vmem:[#allocation5 + $0x334] sm:$0xf0]  ;;  %v2440_v19 = vld [vmem:[#allocation5 + $0x138] sm:$0xf0] }
  0x61   :  { %v2560_v35 = vld [vmem:[#allocation5 + $0x230] sm:$0xf0]  ;;  %v2696_v21 = vld [vmem:[#allocation5 + $0x338] sm:$0xf0]  ;;  %v2695_v23 = vor.u32 %v3476_v17, %v2694_v15  ;;  %v3468_v29 = vld [vmem:[#allocation5 + $0x2f4] sm:$0xf0] }
  0x62   :  { %997 = vmatpush.bf16.msra.mxu0 %v2463_v38  ;;  %1023 = vmatpush.bf16.msra.mxu2 %v2467_v40  ;;  %v2790_v38 = vld [vmem:[#allocation5 + $0x3d8] sm:$0xf]  ;;  %v2563_v47 = vor.u32 %v3439_v34, %v2560_v35  ;;  %v3400_v30 = vld [vmem:[#allocation5 + $0xdc] sm:$0xf]  ;;  %v3516_v9 = vld [vmem:[#allocation8 + $0x74] sm:$0xf0] }
  0x63   :  { %v3500_v40 = vld [vmem:[#allocation5 + $0x3f4] sm:$0xf0]  ;;  %v2632_v45 = vld [vmem:[#allocation5 + $0x2b8] sm:$0xf0] }
  0x64   :  { %1010 = vmatpush.bf16.msra.mxu1 %v2719_v39  ;;  %1036 = vmatpush.bf16.msra.mxu3 %v2723_v44  ;;  %v2303_v39 = vor.u32 %v3379_v26, %v2302_v25  ;;  %v2307_v44 = vor.u32 %v3375_v31, %v2304_v33  ;;  %v2791_v49 = vor.u32 %v3500_v40, %v2790_v38  ;;  %v2406_v25 = vld [vmem:[#allocation5 + $0xd8] sm:$0xf]  ;;  %v2408_v31 = vld [vmem:[#allocation5 + $0xf8] sm:$0xf0] }
  0x65   :  { %v3404_v26 = vld [vmem:[#allocation5 + $0xf4] sm:$0xf0]  ;;  %v2664_v33 = vld [vmem:[#allocation5 + $0x2f8] sm:$0xf0]  ;;  %v2411_v36 = vor.u32 %v3400_v30, %v2408_v31 }
  0x66   :  { %998 = vmatpush.bf16.msra.mxu0 %v2431_v50  ;;  %1024 = vmatpush.bf16.msra.mxu2 %v2435_v52  ;;  %v2539_v50 = vor.u32 %v3432_v41, %v2536_v42  ;;  %v3428_v52 = vld [vmem:[#allocation5 + $0x1b4] sm:$0xf0]  ;;  %v2407_v34 = vor.u32 %v3404_v26, %v2406_v25  ;;  %v3392_v42 = vld [vmem:[#allocation5 + $0x9c] sm:$0xf]  ;;  %v2974_v26 = vld [vmem:[#allocation8 + $0x160] sm:$0xf] }
  0x67   :  { %v2374_v37 = vld [vmem:[#allocation5 + $0x98] sm:$0xf]  ;;  %v2344_v56 = vld [vmem:[#allocation5 + $0x78] sm:$0xf0] }
  0x68   :  { %1011 = vmatpush.bf16.msra.mxu1 %v2687_v51  ;;  %1037 = vmatpush.bf16.msra.mxu3 %v2691_v57  ;;  %v2502_v51 = vld [vmem:[#allocation5 + $0x198] sm:$0xf]  ;;  %v3424_v57 = vld [vmem:[#allocation5 + $0x19c] sm:$0xf] }
  0x69   :  { %v2503_v61 = vor.u32 %v3428_v52, %v2502_v51  ;;  %v3396_v38 = vld [vmem:[#allocation5 + $0xb4] sm:$0xf0]  ;;  %v2312_v5 = vld [vmem:[#allocation5 + $0x38] sm:$0xf0] }
  0x6a   :  { %999 = vmatpush.bf16.msra.mxu0 %v2399_v63  ;;  %1025 = vmatpush.bf16.msra.mxu2 %v2403_v1  ;;  %v2507_v63 = vor.u32 %v3424_v57, %v2504_v58  ;;  %v3420_v1 = vld [vmem:[#allocation5 + $0x174] sm:$0xf0]  ;;  %v2375_v46 = vor.u32 %v3396_v38, %v2374_v37  ;;  %v3448_v57 = vld [vmem:[#allocation5 + $0x25c] sm:$0xf]  ;;  %v2894_v38 = vld [vmem:[#allocation8 + $0xc0] sm:$0xf] }
  0x6b   :  { %v3460_v41 = vld [vmem:[#allocation5 + $0x2b4] sm:$0xf0]  ;;  %v2600_v58 = vld [vmem:[#allocation5 + $0x278] sm:$0xf0] }
  0x6c   :  { %1012 = vmatpush.bf16.msra.mxu1 %v2655_v0  ;;  %1038 = vmatpush.bf16.msra.mxu3 %v2659_v6  ;;  %v2470_v0 = vld [vmem:[#allocation5 + $0x158] sm:$0xf]  ;;  %v3416_v6 = vld [vmem:[#allocation5 + $0x15c] sm:$0xf]  ;;  %v2603_v2 = vor.u32 %v3448_v57, %v2600_v58  ;;  %v3038_v58 = vld [vmem:[#allocation8 + $0x1e0] sm:$0xf] }
  0x6d   :  { %v2471_v10 = vor.u32 %v3420_v1, %v2470_v0  ;;  %v2598_v51 = vld [vmem:[#allocation5 + $0x258] sm:$0xf] }
  0x6e   :  { %1000 = vmatpush.bf16.msra.mxu0 %v2367_v12  ;;  %1026 = vmatpush.bf16.msra.mxu2 %v2371_v14  ;;  %v2475_v12 = vor.u32 %v3416_v6, %v2472_v7  ;;  %v3412_v14 = vld [vmem:[#allocation5 + $0x134] sm:$0xf0]  ;;  %v3440_v6 = vld [vmem:[#allocation5 + $0x21c] sm:$0xf] }
  0x6f   :  { %v3452_v53 = vld [vmem:[#allocation5 + $0x274] sm:$0xf0]  ;;  %v2568_v7 = vld [vmem:[#allocation5 + $0x238] sm:$0xf0] }
  0x70   :  { %1013 = vmatpush.bf16.msra.mxu1 %v2623_v13  ;;  %1039 = vmatpush.bf16.msra.mxu3 %v2627_v18  ;;  %v2438_v13 = vld [vmem:[#allocation5 + $0x118] sm:$0xf]  ;;  %v3408_v18 = vld [vmem:[#allocation5 + $0x11c] sm:$0xf]  ;;  %v2571_v15 = vor.u32 %v3440_v6, %v2568_v7 }
  0x71   :  { %v2439_v22 = vor.u32 %v3412_v14, %v2438_v13  ;;  %v2310_v60 = vld [vmem:[#allocation5 + $0x18] sm:$0xf] }
  0x72   :  { %1001 = vmatpush.bf16.msra.mxu0 %v2335_v24  ;;  %1027 = vmatpush.bf16.msra.mxu2 %v2339_v28  ;;  %v2443_v24 = vor.u32 %v3408_v18, %v2440_v19  ;;  %v2699_v28 = vor.u32 %v3472_v20, %v2696_v21  ;;  %v2566_v0 = vld [vmem:[#allocation5 + $0x218] sm:$0xf]  ;;  %v3548_v18 = vld [vmem:[#allocation8 + $0x174] sm:$0xf0]  ;;  %v2846_v19 = vld [vmem:[#allocation8 + $0x60] sm:$0xf] }
  0x73   :  { %v3444_v1 = vld [vmem:[#allocation5 + $0x234] sm:$0xf0]  ;;  %v3514_v20 = vld [vmem:[#allocation8 + $0x64] sm:$0xf0] }
  0x74   :  { %1014 = vmatpush.bf16.msra.mxu1 %v2591_v27  ;;  %1040 = vmatpush.bf16.msra.mxu3 %v2595_v32  ;;  %v2662_v27 = vld [vmem:[#allocation5 + $0x2d8] sm:$0xf]  ;;  %v3464_v32 = vld [vmem:[#allocation5 + $0x2dc] sm:$0xf]  ;;  %v2567_v13 = vor.u32 %v3444_v1, %v2566_v0  ;;  %v2847_v25 = vor.u32 %v3514_v20, %v2846_v19  ;;  %v2958_v0 = vld [vmem:[#allocation8 + $0x140] sm:$0xf] }
  0x75   :  { %v2663_v35 = vor.u32 %v3468_v29, %v2662_v27  ;;  %v2667_v40 = vor.u32 %v3464_v32, %v2664_v33  ;;  %v2854_v8 = vld [vmem:[#allocation8 + $0x70] sm:$0xf]  ;;  %v3546_v27 = vld [vmem:[#allocation8 + $0x164] sm:$0xf0]  ;;  %v3512_v29 = vld [vmem:[#allocation8 + $0x54] sm:$0xf0] }
  0x76   :  { %1002 = vmatpush.bf16.msra.mxu0 %v2303_v39  ;;  %1028 = vmatpush.bf16.msra.mxu2 %v2307_v44  ;;  %v2630_v39 = vld [vmem:[#allocation5 + $0x298] sm:$0xf]  ;;  %v3456_v44 = vld [vmem:[#allocation5 + $0x29c] sm:$0xf]  ;;  %v3528_v32 = vld [vmem:[#allocation8 + $0xd4] sm:$0xf0]  ;;  %v2975_v33 = vor.u32 %v3546_v27, %v2974_v26 }
  0x77   :  { %v2635_v52 = vor.u32 %v3456_v44, %v2632_v45  ;;  %v2982_v17 = vld [vmem:[#allocation8 + $0x170] sm:$0xf]  ;;  %v3508_v44 = vld [vmem:[#allocation8 + $0x34] sm:$0xf0] }
  0x78   :  { %1015 = vmatpush.bf16.msra.mxu1 %v2559_v43  ;;  %1041 = vmatpush.bf16.msra.mxu3 %v2563_v47  ;;  %v2376_v43 = vld [vmem:[#allocation5 + $0xb8] sm:$0xf0]  ;;  %v2631_v47 = vor.u32 %v3460_v41, %v2630_v39  ;;  %v2902_v31 = vld [vmem:[#allocation8 + $0xd0] sm:$0xf]  ;;  %v3526_v39 = vld [vmem:[#allocation8 + $0xc4] sm:$0xf0] }
  0x79   :  { %1003 = vmatmul.bf16.vlgmr.msra.gmra.mxu0 %v3852_v55  ;;  %1029 = vmatmul.bf16.vlgmr.msra.gmra.mxu2 %v3852_v55  ;;  %v2903_v37 = vor.u32 %v3528_v32, %v2902_v31  ;;  %v3564_v41 = vld [vmem:[#allocation8 + $0x1f4] sm:$0xf0]  ;;  %v2886_v45 = vld [vmem:[#allocation8 + $0xb0] sm:$0xf]  ;;  %v3578_v31 = vld [vmem:[#allocation8 + $0x264] sm:$0xf0] }
  0x7a   :  { %1047 = vmatpush.bf16.msrb.mxu0 %v2535_v48  ;;  %1073 = vmatpush.bf16.msrb.mxu2 %v2539_v50  ;;  %v2379_v48 = vor.u32 %v3392_v42, %v2376_v43  ;;  %v3388_v50 = vld [vmem:[#allocation5 + $0x74] sm:$0xf0]  ;;  %v3596_v20 = vld [vmem:[#allocation8 + $0x2f4] sm:$0xf0] }
  0x7b   :  { %1016 = vmatmul.bf16.vlgmr.msra.gmra.mxu1 %v3856_v3  ;;  %1042 = vmatmul.bf16.vlgmr.msra.gmra.mxu3 %v3856_v3  ;;  %v2822_v43 = vld [vmem:[#allocation8 + $0x30] sm:$0xf] }
  0x7c   :  { %1060 = vmatpush.bf16.msrb.mxu1 %v2791_v49  ;;  %1086 = vmatpush.bf16.msrb.mxu3 %v2795_v54  ;;  %v2342_v49 = vld [vmem:[#allocation5 + $0x58] sm:$0xf]  ;;  %v3384_v54 = vld [vmem:[#allocation5 + $0x5c] sm:$0xf] }
  0x7d   :  { %v2343_v59 = vor.u32 %v3388_v50, %v2342_v49  ;;  %v3506_v49 = vld [vmem:[#allocation8 + $0x24] sm:$0xf0]  ;;  %v2870_v1 = vld [vmem:[#allocation8 + $0x90] sm:$0xf] }
  0x7e   :  { %1048 = vmatpush.bf16.msrb.mxu0 %v2503_v61  ;;  %1074 = vmatpush.bf16.msrb.mxu2 %v2507_v63  ;;  %v2599_v61 = vor.u32 %v3452_v53, %v2598_v51  ;;  %v3380_v63 = vld [vmem:[#allocation5 + $0x34] sm:$0xf0]  ;;  %v2878_v51 = vld [vmem:[#allocation8 + $0xa0] sm:$0xf] }
  0x7f   :  { %v2966_v53 = vld [vmem:[#allocation8 + $0x150] sm:$0xf] }
  0x80   :  { %1061 = vmatpush.bf16.msrb.mxu1 %v2759_v62  ;;  %1087 = vmatpush.bf16.msrb.mxu3 %v2763_v4  ;;  %v2347_v62 = vor.u32 %v3384_v54, %v2344_v56  ;;  %v3376_v4 = vld [vmem:[#allocation5 + $0x1c] sm:$0xf]  ;;  %v3544_v54 = vld [vmem:[#allocation8 + $0x154] sm:$0xf0]  ;;  %v3174_v19 = vld [vmem:[#allocation8 + $0x2f0] sm:$0xf] }
  0x81   :  { %v2315_v14 = vor.u32 %v3376_v4, %v2312_v5  ;;  %v2967_v57 = vor.u32 %v3544_v54, %v2966_v53  ;;  %v3542_v4 = vld [vmem:[#allocation8 + $0x144] sm:$0xf0]  ;;  %v2798_v5 = vld [vmem:[#allocation8] sm:$0xf]  ;;  %v3175_v32 = vor.u32 %v3596_v20, %v3174_v19  ;;  %v2934_v53 = vld [vmem:[#allocation8 + $0x110] sm:$0xf] }
  0x82   :  { %1049 = vmatpush.bf16.msrb.mxu0 %v2471_v10  ;;  %1075 = vmatpush.bf16.msrb.mxu2 %v2475_v12  ;;  %v2311_v10 = vor.u32 %v3380_v63, %v2310_v60  ;;  %v3532_v12 = vld [vmem:[#allocation8 + $0xf4] sm:$0xf0]  ;;  %v2806_v60 = vld [vmem:[#allocation8 + $0x10] sm:$0xf]  ;;  %v2959_v6 = vor.u32 %v3542_v4, %v2958_v0  ;;  %v3554_v0 = vld [vmem:[#allocation8 + $0x1a4] sm:$0xf0] }
  0x83   :  { %v3536_v54 = vld [vmem:[#allocation8 + $0x114] sm:$0xf0] }
  0x84   :  { %1062 = vmatpush.bf16.msrb.mxu1 %v2727_v11  ;;  %1088 = vmatpush.bf16.msrb.mxu3 %v2731_v16  ;;  %v2918_v11 = vld [vmem:[#allocation8 + $0xf0] sm:$0xf]  ;;  %v2855_v16 = vor.u32 %v3516_v9, %v2854_v8  ;;  %v3502_v8 = vld [vmem:[#allocation8 + $0x4] sm:$0xf0] }
  0x85   :  { %v2919_v21 = vor.u32 %v3532_v12, %v2918_v11  ;;  %v3110_v9 = vld [vmem:[#allocation8 + $0x270] sm:$0xf]  ;;  %v2862_v12 = vld [vmem:[#allocation8 + $0x80] sm:$0xf] }
  0x86   :  { %1050 = vmatpush.bf16.msrb.mxu0 %v2439_v22  ;;  %1076 = vmatpush.bf16.msrb.mxu2 %v2443_v24  ;;  %v2910_v22 = vld [vmem:[#allocation8 + $0xe0] sm:$0xf]  ;;  %v2983_v24 = vor.u32 %v3548_v18, %v2982_v17  ;;  %v2950_v17 = vld [vmem:[#allocation8 + $0x130] sm:$0xf]  ;;  %v3540_v18 = vld [vmem:[#allocation8 + $0x134] sm:$0xf0] }
  0x88   :  { %1063 = vmatpush.bf16.msrb.mxu1 %v2695_v23  ;;  %1089 = vmatpush.bf16.msrb.mxu3 %v2699_v28  ;;  %v3530_v23 = vld [vmem:[#allocation8 + $0xe4] sm:$0xf0]  ;;  %v2838_v28 = vld [vmem:[#allocation8 + $0x50] sm:$0xf] }
  0x89   :  { %v2911_v30 = vor.u32 %v3530_v23, %v2910_v22  ;;  %v3022_v22 = vld [vmem:[#allocation8 + $0x1c0] sm:$0xf]  ;;  %v2799_v23 = vor.u32 %v3502_v8, %v2798_v5 }
  0x8a   :  { %1051 = vmatpush.bf16.msrb.mxu0 %v2407_v34  ;;  %1077 = vmatpush.bf16.msrb.mxu2 %v2411_v36  ;;  %v2839_v34 = vor.u32 %v3512_v29, %v2838_v28  ;;  %v3510_v36 = vld [vmem:[#allocation8 + $0x44] sm:$0xf0]  ;;  %v2942_v28 = vld [vmem:[#allocation8 + $0x120] sm:$0xf] }
  0x8b   :  { %v3538_v29 = vld [vmem:[#allocation8 + $0x124] sm:$0xf0] }
  0x8c   :  { %1064 = vmatpush.bf16.msrb.mxu1 %v2663_v35  ;;  %1090 = vmatpush.bf16.msrb.mxu3 %v2667_v40  ;;  %v2830_v35 = vld [vmem:[#allocation8 + $0x40] sm:$0xf]  ;;  %v3046_v40 = vld [vmem:[#allocation8 + $0x1f0] sm:$0xf] }
  0x8d   :  { %v3047_v42 = vor.u32 %v3564_v41, %v3046_v40  ;;  %v3158_v41 = vld [vmem:[#allocation8 + $0x2d0] sm:$0xf] }
  0x8e   :  { %1052 = vmatpush.bf16.msrb.mxu0 %v2375_v46  ;;  %1078 = vmatpush.bf16.msrb.mxu2 %v2379_v48  ;;  %v3524_v46 = vld [vmem:[#allocation8 + $0xb4] sm:$0xf0]  ;;  %v2814_v48 = vld [vmem:[#allocation8 + $0x20] sm:$0xf] }
  0x8f   :  { %v2887_v50 = vor.u32 %v3524_v46, %v2886_v45  ;;  %v2815_v56 = vor.u32 %v3506_v49, %v2814_v48  ;;  %v3150_v46 = vld [vmem:[#allocation8 + $0x2c0] sm:$0xf]  ;;  %v3014_v48 = vld [vmem:[#allocation8 + $0x1b0] sm:$0xf]  ;;  %v3556_v49 = vld [vmem:[#allocation8 + $0x1b4] sm:$0xf0] }
  0x90   :  { %1065 = vmatpush.bf16.msrb.mxu1 %v2631_v47  ;;  %1091 = vmatpush.bf16.msrb.mxu3 %v2635_v52  ;;  %v2823_v47 = vor.u32 %v3508_v44, %v2822_v43  ;;  %v3522_v52 = vld [vmem:[#allocation8 + $0xa4] sm:$0xf0]  ;;  %v3086_v44 = vld [vmem:[#allocation8 + $0x240] sm:$0xf] }
  0x92   :  { %1053 = vmatpush.bf16.msrb.mxu0 %v2343_v59  ;;  %1079 = vmatpush.bf16.msrb.mxu2 %v2347_v62  ;;  %v3562_v59 = vld [vmem:[#allocation8 + $0x1e4] sm:$0xf0]  ;;  %v2879_v62 = vor.u32 %v3522_v52, %v2878_v51 }
  0x93   :  { %v3039_v63 = vor.u32 %v3562_v59, %v3038_v58  ;;  %v3572_v58 = vld [vmem:[#allocation8 + $0x234] sm:$0xf0] }
  0x94   :  { %1066 = vmatpush.bf16.msrb.mxu1 %v2599_v61  ;;  %1092 = vmatpush.bf16.msrb.mxu3 %v2603_v2  ;;  %v3504_v61 = vld [vmem:[#allocation8 + $0x14] sm:$0xf0] }
  0x95   :  { %v3520_v2 = vld [vmem:[#allocation8 + $0x94] sm:$0xf0]  ;;  %v2807_v7 = vor.u32 %v3504_v61, %v2806_v60  ;;  %v2935_v60 = vor.u32 %v3536_v54, %v2934_v53  ;;  %v3142_v61 = vld [vmem:[#allocation8 + $0x2b0] sm:$0xf]  ;;  %v3531_v53 = vld [vmem:[#allocation8 + $0xf4] sm:$0xf] }
  0x96   :  { %1054 = vmatpush.bf16.msrb.mxu0 %v2311_v10  ;;  %1080 = vmatpush.bf16.msrb.mxu2 %v2315_v14  ;;  %v3580_v10 = vld [vmem:[#allocation8 + $0x274] sm:$0xf0]  ;;  %v2871_v11 = vor.u32 %v3520_v2, %v2870_v1  ;;  %v2920_v54 = vld [vmem:[#allocation8 + $0xf8] sm:$0xf0] }
  0x97   :  { %v3560_v14 = vld [vmem:[#allocation8 + $0x1d4] sm:$0xf0] }
  0x98   :  { %1067 = vmatpush.bf16.msrb.mxu1 %v2567_v13  ;;  %1093 = vmatpush.bf16.msrb.mxu3 %v2571_v15  ;;  %v3030_v13 = vld [vmem:[#allocation8 + $0x1d0] sm:$0xf]  ;;  %v3518_v15 = vld [vmem:[#allocation8 + $0x84] sm:$0xf0] }
  0x99   :  { %1055 = vmatmul.bf16.vlgmr.msrb.gmra.mxu0 %v3852_v55  ;;  %1081 = vmatmul.bf16.vlgmr.msrb.gmra.mxu2 %v3852_v55  ;;  %v2831_v55 = vor.u32 %v3510_v36, %v2830_v35  ;;  %v2863_v26 = vor.u32 %v3518_v15, %v2862_v12  ;;  %v3594_v35 = vld [vmem:[#allocation8 + $0x2e4] sm:$0xf0]  ;;  %v2998_v15 = vld [vmem:[#allocation8 + $0x190] sm:$0xf] }
  0x9a   :  { %1889 = vmatpush.bf16.msra.mxu0 %v2855_v16  ;;  %1915 = vmatpush.bf16.msra.mxu2 %v2983_v24  ;;  %v3031_v16 = vor.u32 %v3560_v14, %v3030_v13  ;;  %v3558_v24 = vld [vmem:[#allocation8 + $0x1c4] sm:$0xf0]  ;;  %v3134_v13 = vld [vmem:[#allocation8 + $0x2a0] sm:$0xf] }
  0x9b   :  { %1068 = vmatmul.bf16.vlgmr.msrb.gmra.mxu1 %v3856_v3  ;;  %1094 = vmatmul.bf16.vlgmr.msrb.gmra.mxu3 %v3856_v3  ;;  %v2895_v3 = vor.u32 %v3526_v39, %v2894_v38  ;;  %v3023_v27 = vor.u32 %v3558_v24, %v3022_v22  ;;  %v3094_v38 = vld [vmem:[#allocation8 + $0x250] sm:$0xf]  ;;  %v3576_v39 = vld [vmem:[#allocation8 + $0x254] sm:$0xf0]  ;;  %v3586_v14 = vld [vmem:[#allocation8 + $0x2a4] sm:$0xf0] }
  0x9c   :  { %1902 = vmatpush.bf16.msra.mxu1 %v2919_v21  ;;  %1928 = vmatpush.bf16.msra.mxu3 %v3047_v42  ;;  %v2951_v21 = vor.u32 %v3540_v18, %v2950_v17  ;;  %v3592_v42 = vld [vmem:[#allocation8 + $0x2d4] sm:$0xf0]  ;;  %v3095_v43 = vor.u32 %v3576_v39, %v3094_v38 }
  0x9d   :  { %v3159_v45 = vor.u32 %v3592_v42, %v3158_v41  ;;  %v3612_v24 = vld [vmem:[#allocation8 + $0x374] sm:$0xf0]  ;;  %v3515_v42 = vld [vmem:[#allocation8 + $0x74] sm:$0xf] }
  0x9e   :  { %1890 = vmatpush.bf16.msra.mxu0 %v2847_v25  ;;  %1916 = vmatpush.bf16.msra.mxu2 %v2975_v33  ;;  %v3111_v25 = vor.u32 %v3580_v10, %v3110_v9  ;;  %v2943_v33 = vor.u32 %v3538_v29, %v2942_v28  ;;  %v3070_v9 = vld [vmem:[#allocation8 + $0x220] sm:$0xf]  ;;  %v3570_v10 = vld [vmem:[#allocation8 + $0x224] sm:$0xf0]  ;;  %v3135_v28 = vor.u32 %v3586_v14, %v3134_v13  ;;  %v3624_v13 = vld [vmem:[#allocation8 + $0x3d4] sm:$0xf0] }
  0x9f   :  { %v3071_v22 = vor.u32 %v3570_v10, %v3070_v9  ;;  %v3529_v9 = vld [vmem:[#allocation8 + $0xe4] sm:$0xf]  ;;  %v2912_v10 = vld [vmem:[#allocation8 + $0xe8] sm:$0xf0] }
  0xa0   :  { %1903 = vmatpush.bf16.msra.mxu1 %v2911_v30  ;;  %1929 = vmatpush.bf16.msra.mxu3 %v3039_v63  ;;  %v3102_v30 = vld [vmem:[#allocation8 + $0x260] sm:$0xf] }
  0xa1   :  { %v3103_v36 = vor.u32 %v3578_v31, %v3102_v30  ;;  %v3006_v63 = vld [vmem:[#allocation8 + $0x1a0] sm:$0xf]  ;;  %v3126_v30 = vld [vmem:[#allocation8 + $0x290] sm:$0xf]  ;;  %v3584_v31 = vld [vmem:[#allocation8 + $0x294] sm:$0xf0] }
  0xa2   :  { %1891 = vmatpush.bf16.msra.mxu0 %v2839_v34  ;;  %1917 = vmatpush.bf16.msra.mxu2 %v2967_v57  ;;  %v3166_v34 = vld [vmem:[#allocation8 + $0x2e0] sm:$0xf]  ;;  %v3078_v57 = vld [vmem:[#allocation8 + $0x230] sm:$0xf]  ;;  %v3007_v1 = vor.u32 %v3554_v0, %v3006_v63 }
  0xa3   :  { %v3167_v40 = vor.u32 %v3594_v35, %v3166_v34  ;;  %v3079_v5 = vor.u32 %v3572_v58, %v3078_v57  ;;  %v3054_v35 = vld [vmem:[#allocation8 + $0x200] sm:$0xf] }
  0xa4   :  { %1904 = vmatpush.bf16.msra.mxu1 %v2903_v37  ;;  %1930 = vmatpush.bf16.msra.mxu3 %v3031_v16  ;;  %v3872_v37 = vld [vmem:[#allocation7] sm:$0xff]  ;;  %v3294_v0 = vld [vmem:[#allocation8 + $0x3e0] sm:$0xf] }
  0xa5   :  { %v236_v4 = vperm.slane %v3872_v37, 1  ;;  %v3552_v16 = vld [vmem:[#allocation8 + $0x194] sm:$0xf0] }
  0xa6   :  { %1892 = vmatpush.bf16.msra.mxu0 %v2831_v55  ;;  %1918 = vmatpush.bf16.msra.mxu2 %v2959_v6  ;;  %v235_v55 = vperm.slane %v3872_v37, 0  ;;  %v2926_v6 = vld [vmem:[#allocation8 + $0x100] sm:$0xf]  ;;  %v2999_v19 = vor.u32 %v3552_v16, %v2998_v15  ;;  %v3206_v15 = vld [vmem:[#allocation8 + $0x330] sm:$0xf] }
  0xa7   :  { %v3604_v16 = vld [vmem:[#allocation8 + $0x334] sm:$0xf0] }
  0xa8   :  { %1905 = vmatpush.bf16.msra.mxu1 %v2895_v3  ;;  %1931 = vmatpush.bf16.msra.mxu3 %v3023_v27  ;;  %v3574_v3 = vld [vmem:[#allocation8 + $0x244] sm:$0xf0]  ;;  %v3568_v27 = vld [vmem:[#allocation8 + $0x214] sm:$0xf0] }
  0xa9   :  { %v3087_v52 = vor.u32 %v3574_v3, %v3086_v44  ;;  %v2856_v44 = vld [vmem:[#allocation8 + $0x78] sm:$0xf0]  ;;  %v3127_v3 = vor.u32 %v3584_v31, %v3126_v30 }
  0xaa   :  { %1893 = vmatpush.bf16.msra.mxu0 %v2823_v47  ;;  %1919 = vmatpush.bf16.msra.mxu2 %v2951_v21  ;;  %v3590_v47 = vld [vmem:[#allocation8 + $0x2c4] sm:$0xf0] }
  0xab   :  { %v3151_v59 = vor.u32 %v3590_v47, %v3150_v46  ;;  %v3118_v46 = vld [vmem:[#allocation8 + $0x280] sm:$0xf]  ;;  %v3582_v47 = vld [vmem:[#allocation8 + $0x284] sm:$0xf0] }
  0xac   :  { %1906 = vmatpush.bf16.msra.mxu1 %v2887_v50  ;;  %v3015_v50 = vor.u32 %v3556_v49, %v3014_v48  ;;  %v3302_v49 = vld [vmem:[#allocation8 + $0x3f0] sm:$0xf] }
  0xae   :  { %1894 = vmatpush.bf16.msra.mxu0 %v2815_v56  ;;  %1920 = vmatpush.bf16.msra.mxu2 %v2943_v33  ;;  %v3550_v33 = vld [vmem:[#allocation8 + $0x184] sm:$0xf0] }
  0xaf   :  { %1932 = vmatpush.bf16.msra.mxu3 %v3015_v50  ;;  %v3628_v50 = vld [vmem:[#allocation8 + $0x3f4] sm:$0xf0] }
  0xb0   :  { %1907 = vmatpush.bf16.msra.mxu1 %v2879_v62  ;;  %v3588_v62 = vld [vmem:[#allocation8 + $0x2b4] sm:$0xf0] }
  0xb2   :  { %1895 = vmatpush.bf16.msra.mxu0 %v2807_v7  ;;  %1921 = vmatpush.bf16.msra.mxu2 %v2935_v60  ;;  %v3534_v7 = vld [vmem:[#allocation8 + $0x104] sm:$0xf0]  ;;  %v2859_v60 = vor.u32 %v3515_v42, %v2856_v44  ;;  %v2824_v42 = vld [vmem:[#allocation8 + $0x38] sm:$0xf0]  ;;  %v3620_v44 = vld [vmem:[#allocation8 + $0x3b4] sm:$0xf0] }
  0xb3   :  { %1933 = vmatpush.bf16.msra.mxu3 %v3007_v1  ;;  %v2927_v12 = vor.u32 %v3534_v7, %v2926_v6  ;;  %v3626_v1 = vld [vmem:[#allocation8 + $0x3e4] sm:$0xf0]  ;;  %v3214_v6 = vld [vmem:[#allocation8 + $0x340] sm:$0xf] }
  0xb4   :  { %1908 = vmatpush.bf16.msra.mxu1 %v2871_v11  ;;  %v3143_v11 = vor.u32 %v3588_v62, %v3142_v61  ;;  %v3513_v61 = vld [vmem:[#allocation8 + $0x64] sm:$0xf]  ;;  %v3119_v62 = vor.u32 %v3582_v47, %v3118_v46  ;;  %v3606_v7 = vld [vmem:[#allocation8 + $0x344] sm:$0xf0]  ;;  %v3523_v47 = vld [vmem:[#allocation8 + $0xb4] sm:$0xf] }
  0xb6   :  { %1896 = vmatpush.bf16.msra.mxu0 %v2799_v23  ;;  %v900_v51 = vpop.f32.mrf.mxu0  ;;  %1922 = vmatpush.bf16.msra.mxu2 %v2927_v12  ;;  %v3238_v23 = vld [vmem:[#allocation8 + $0x370] sm:$0xf] }
  0xb7   :  { %v901_v56 = vadd.f32 %v900_v51, %v235_v55  ;;  %1934 = vmatpush.bf16.msra.mxu3 %v2999_v19  ;;  %v3239_v29 = vor.u32 %v3612_v24, %v3238_v23  ;;  %v3230_v55 = vld [vmem:[#allocation8 + $0x360] sm:$0xf]  ;;  %v3286_v12 = vld [vmem:[#allocation8 + $0x3d0] sm:$0xf]  ;;  %v2915_v19 = vor.u32 %v3529_v9, %v2912_v10  ;;  %v3207_v23 = vor.u32 %v3604_v16, %v3206_v15  ;;  %v3547_v9 = vld [vmem:[#allocation8 + $0x174] sm:$0xf] }
  0xb8   :  { %1909 = vmatpush.bf16.msra.mxu1 %v2863_v26  ;;  %v913_v2 = vpop.f32.mrf.mxu1  ;;  %v3062_v26 = vld [vmem:[#allocation8 + $0x210] sm:$0xf]  ;;  %v3278_v24 = vld [vmem:[#allocation8 + $0x3c0] sm:$0xf]  ;;  %v2984_v10 = vld [vmem:[#allocation8 + $0x178] sm:$0xf0] }
  0xb9   :  { %v914_v8 = vadd.f32 %v913_v2, %v901_v56  ;;  %v3063_v41 = vor.u32 %v3568_v27, %v3062_v26  ;;  %v3222_v56 = vld [vmem:[#allocation8 + $0x350] sm:$0xf]  ;;  %v2848_v2 = vld [vmem:[#allocation8 + $0x68] sm:$0xf0]  ;;  %v3622_v26 = vld [vmem:[#allocation8 + $0x3c4] sm:$0xf0] }
  0xba   :  { %1941 = vmatpush.bf16.msrb.mxu0 %v3111_v25  ;;  %1967 = vmatpush.bf16.msrb.mxu2 %v3239_v29  ;;  %v2851_v14 = vor.u32 %v3513_v61, %v2848_v2  ;;  %v2832_v29 = vld [vmem:[#allocation8 + $0x48] sm:$0xf0]  ;;  %v3279_v31 = vor.u32 %v3622_v26, %v3278_v24  ;;  %v3618_v61 = vld [vmem:[#allocation8 + $0x3a4] sm:$0xf0]  ;;  %v3182_v2 = vld [vmem:[#allocation8 + $0x300] sm:$0xf] }
  0xbb   :  { %v1099_v17 = vmax.f32 %v914_v8, 0.0  ;;  %v2808_v15 = vld [vmem:[#allocation8 + $0x18] sm:$0xf0] }
  0xbc   :  { %1954 = vmatpush.bf16.msrb.mxu1 %v3175_v32  ;;  %v926_v18 = vpop.f32.mrf.mxu2  ;;  %v2990_v32 = vld [vmem:[#allocation8 + $0x180] sm:$0xf] }
  0xbd   :  { %v927_v20 = vadd.f32 %v926_v18, %v236_v4  ;;  %v3876_v25 = vpack.c.bf16 %v1099_v17, %v1099_v17  ;;  %v2991_v38 = vor.u32 %v3550_v33, %v2990_v32  ;;  %v2923_v4 = vor.u32 %v3531_v53, %v2920_v54  ;;  %v3511_v17 = vld [vmem:[#allocation8 + $0x54] sm:$0xf]  ;;  %v2840_v18 = vld [vmem:[#allocation8 + $0x58] sm:$0xf0]  ;;  %v3525_v33 = vld [vmem:[#allocation8 + $0xc4] sm:$0xf] }
  0xbe   :  { %1942 = vmatpush.bf16.msrb.mxu0 %v3103_v36  ;;  %v902_v21 = vpop.f32.mrf.mxu0  ;;  %v939_v34 = vpop.f32.mrf.mxu3  ;;  %v3566_v36 = vld [vmem:[#allocation8 + $0x204] sm:$0xf0]  ;;  %v2843_v27 = vor.u32 %v3511_v17, %v2840_v18  ;;  %v237_v32 = vperm.slane %v3872_v37, 2  ;;  %v3505_v54 = vld [vmem:[#allocation8 + $0x24] sm:$0xf]  ;;  %v2987_v17 = vor.u32 %v3547_v9, %v2984_v10 }
  0xbf   :  { %1897 = vmatmul.bf16.vlgmr.msra.gmra.mxu0 %v3876_v25  ;;  %v940_v39 = vadd.f32 %v939_v34, %v927_v20  ;;  %1935 = vmatpush.bf16.msra.mxu3 %v2991_v38  ;;  %v3055_v58 = vor.u32 %v3566_v36, %v3054_v35  ;;  %v3287_v20 = vor.u32 %v3624_v13, %v3286_v12  ;;  %v3527_v21 = vld [vmem:[#allocation8 + $0xd4] sm:$0xf]  ;;  %v2896_v34 = vld [vmem:[#allocation8 + $0xc8] sm:$0xf0]  ;;  %v3198_v35 = vld [vmem:[#allocation8 + $0x320] sm:$0xf] }
  0xc0   :  { %1955 = vmatpush.bf16.msrb.mxu1 %v3167_v40  ;;  %v915_v40 = vpop.f32.mrf.mxu1  ;;  %v3602_v36 = vld [vmem:[#allocation8 + $0x324] sm:$0xf0]  ;;  %v3254_v18 = vld [vmem:[#allocation8 + $0x390] sm:$0xf]  ;;  %v3016_v9 = vld [vmem:[#allocation8 + $0x1b8] sm:$0xf0] }
  0xc1   :  { %v1100_v48 = vmax.f32 %v940_v39, 0.0  ;;  %v3507_v39 = vld [vmem:[#allocation8 + $0x34] sm:$0xf]  ;;  %v3199_v40 = vor.u32 %v3602_v36, %v3198_v35  ;;  %v3614_v35 = vld [vmem:[#allocation8 + $0x384] sm:$0xf0] }
  0xc2   :  { %1943 = vmatpush.bf16.msrb.mxu0 %v3095_v43  ;;  %v3610_v43 = vld [vmem:[#allocation8 + $0x364] sm:$0xf0]  ;;  %v2827_v53 = vor.u32 %v3507_v39, %v2824_v42  ;;  %v3517_v36 = vld [vmem:[#allocation8 + $0x84] sm:$0xf]  ;;  %v3048_v42 = vld [vmem:[#allocation8 + $0x1f8] sm:$0xf0] }
  0xc3   :  { %v3879_v57 = vpack.c.bf16 %v1100_v48, %v1100_v48  ;;  %v2888_v48 = vld [vmem:[#allocation8 + $0xb8] sm:$0xf0] }
  0xc4   :  { %1956 = vmatpush.bf16.msrb.mxu1 %v3159_v45  ;;  %v3231_v45 = vor.u32 %v3610_v43, %v3230_v55  ;;  %v928_v51 = vpop.f32.mrf.mxu2  ;;  %v2899_v55 = vor.u32 %v3525_v33, %v2896_v34  ;;  %v3270_v43 = vld [vmem:[#allocation8 + $0x3b0] sm:$0xf]  ;;  %v3246_v34 = vld [vmem:[#allocation8 + $0x380] sm:$0xf] }
  0xc5   :  { %1910 = vmatmul.bf16.vlgmr.msra.gmra.mxu1 %v3879_v57  ;;  %v3271_v46 = vor.u32 %v3620_v44, %v3270_v43 }
  0xc6   :  { %1944 = vmatpush.bf16.msrb.mxu0 %v3087_v52  ;;  %1968 = vmatpush.bf16.msrb.mxu2 %v3231_v45  ;;  %v3303_v52 = vor.u32 %v3628_v50, %v3302_v49  ;;  %v941_v8 = vpop.f32.mrf.mxu3  ;;  %v3190_v49 = vld [vmem:[#allocation8 + $0x310] sm:$0xf]  ;;  %v3600_v50 = vld [vmem:[#allocation8 + $0x314] sm:$0xf0] }
  0xc8   :  { %1957 = vmatpush.bf16.msrb.mxu1 %v3151_v59  ;;  %v3608_v59 = vld [vmem:[#allocation8 + $0x354] sm:$0xf0]  ;;  %1980 = vmatpush.bf16.msrb.mxu3 %v3303_v52  ;;  %v238_v52 = vperm.slane %v3872_v37, 3 }
  0xc9   :  { %v3223_v63 = vor.u32 %v3608_v59, %v3222_v56  ;;  %v3191_v56 = vor.u32 %v3600_v50, %v3190_v49  ;;  %v2891_v59 = vor.u32 %v3523_v47, %v2888_v48  ;;  %v3561_v49 = vld [vmem:[#allocation8 + $0x1e4] sm:$0xf]  ;;  %v3040_v50 = vld [vmem:[#allocation8 + $0x1e8] sm:$0xf0] }
  0xca   :  { %1945 = vmatpush.bf16.msrb.mxu0 %v3079_v5  ;;  %v3295_v5 = vor.u32 %v3626_v1, %v3294_v0  ;;  %v3521_v0 = vld [vmem:[#allocation8 + $0xa4] sm:$0xf]  ;;  %v2880_v1 = vld [vmem:[#allocation8 + $0xa8] sm:$0xf0] }
  0xcb   :  { %1969 = vmatpush.bf16.msrb.mxu2 %v3223_v63  ;;  %v2883_v16 = vor.u32 %v3521_v0, %v2880_v1  ;;  %v3024_v0 = vld [vmem:[#allocation8 + $0x1c8] sm:$0xf0] }
  0xcc   :  { %1958 = vmatpush.bf16.msrb.mxu1 %v3143_v11  ;;  %v3215_v11 = vor.u32 %v3606_v7, %v3214_v6  ;;  %1981 = vmatpush.bf16.msrb.mxu3 %v3295_v5 }
  0xce   :  { %1946 = vmatpush.bf16.msrb.mxu0 %v3071_v22  ;;  %v2904_v22 = vld [vmem:[#allocation8 + $0xd8] sm:$0xf0] }
  0xcf   :  { %1970 = vmatpush.bf16.msrb.mxu2 %v3215_v11  ;;  %v2907_v30 = vor.u32 %v3527_v21, %v2904_v22  ;;  %v3519_v21 = vld [vmem:[#allocation8 + $0x94] sm:$0xf]  ;;  %v2872_v22 = vld [vmem:[#allocation8 + $0x98] sm:$0xf0] }
  0xd0   :  { %1959 = vmatpush.bf16.msrb.mxu1 %v3135_v28  ;;  %v3509_v28 = vld [vmem:[#allocation8 + $0x44] sm:$0xf]  ;;  %1982 = vmatpush.bf16.msrb.mxu3 %v3287_v20  ;;  %v3616_v20 = vld [vmem:[#allocation8 + $0x394] sm:$0xf0] }
  0xd1   :  { %v2835_v38 = vor.u32 %v3509_v28, %v2832_v29  ;;  %v3255_v24 = vor.u32 %v3616_v20, %v3254_v18  ;;  %v3545_v28 = vld [vmem:[#allocation8 + $0x164] sm:$0xf]  ;;  %v2976_v29 = vld [vmem:[#allocation8 + $0x168] sm:$0xf0] }
  0xd2   :  { %1947 = vmatpush.bf16.msrb.mxu0 %v3063_v41  ;;  %v2979_v33 = vor.u32 %v3545_v28, %v2976_v29  ;;  %v3553_v20 = vld [vmem:[#allocation8 + $0x1a4] sm:$0xf] }
  0xd3   :  { %1971 = vmatpush.bf16.msrb.mxu2 %v3207_v23  ;;  %v3577_v29 = vld [vmem:[#allocation8 + $0x264] sm:$0xf] }
  0xd4   :  { %1960 = vmatpush.bf16.msrb.mxu1 %v3127_v3  ;;  %1983 = vmatpush.bf16.msrb.mxu3 %v3279_v31  ;;  %v2800_v31 = vld [vmem:[#allocation8 + $0x8] sm:$0xf0] }
  0xd6   :  { %1948 = vmatpush.bf16.msrb.mxu0 %v3055_v58  ;;  %v952_v41 = vpop.f32.mrf.mxu0  ;;  %v2816_v58 = vld [vmem:[#allocation8 + $0x28] sm:$0xf0] }
  0xd7   :  { %v953_v3 = vadd.f32 %v952_v41, %v237_v32  ;;  %1972 = vmatpush.bf16.msrb.mxu2 %v3199_v40  ;;  %v2819_v7 = vor.u32 %v3505_v54, %v2816_v58  ;;  %v2875_v32 = vor.u32 %v3519_v21, %v2872_v22  ;;  %v3247_v40 = vor.u32 %v3614_v35, %v3246_v34  ;;  %v3563_v41 = vld [vmem:[#allocation8 + $0x1f4] sm:$0xf]  ;;  %v3032_v58 = vld [vmem:[#allocation8 + $0x1d8] sm:$0xf0]  ;;  %v3008_v21 = vld [vmem:[#allocation8 + $0x1a8] sm:$0xf0] }
  0xd8   :  { %1961 = vmatpush.bf16.msrb.mxu1 %v3119_v62  ;;  %v965_v45 = vpop.f32.mrf.mxu1  ;;  %1984 = vmatpush.bf16.msrb.mxu3 %v3271_v46  ;;  %v3051_v44 = vor.u32 %v3563_v41, %v3048_v42  ;;  %v240_v22 = vperm.slane %v3872_v37, 5  ;;  %v3551_v34 = vld [vmem:[#allocation8 + $0x194] sm:$0xf]  ;;  %v3000_v35 = vld [vmem:[#allocation8 + $0x198] sm:$0xf0] }
  0xd9   :  { %v966_v51 = vadd.f32 %v965_v45, %v953_v3  ;;  %v3543_v3 = vld [vmem:[#allocation8 + $0x154] sm:$0xf]  ;;  %v2968_v45 = vld [vmem:[#allocation8 + $0x158] sm:$0xf0]  ;;  %v3003_v41 = vor.u32 %v3551_v34, %v3000_v35 }
  0xda   :  { %1993 = vmatpush.bf16.msra.mxu0 %v2859_v60  ;;  %v3262_v60 = vld [vmem:[#allocation8 + $0x3a0] sm:$0xf]  ;;  %v2971_v48 = vor.u32 %v3543_v3, %v2968_v45  ;;  %v3176_v3 = vld [vmem:[#allocation8 + $0x2f8] sm:$0xf0]  ;;  %v3575_v45 = vld [vmem:[#allocation8 + $0x254] sm:$0xf] }
  0xdb   :  { %v1101_v62 = vmax.f32 %v966_v51, 0.0  ;;  %1973 = vmatpush.bf16.msrb.mxu2 %v3191_v56  ;;  %v3263_v63 = vor.u32 %v3618_v61, %v3262_v60  ;;  %v3043_v51 = vor.u32 %v3561_v49, %v3040_v50  ;;  %v3559_v56 = vld [vmem:[#allocation8 + $0x1d4] sm:$0xf]  ;;  %v2952_v61 = vld [vmem:[#allocation8 + $0x138] sm:$0xf0] }
  0xdc   :  { %2006 = vmatpush.bf16.msra.mxu1 %v2923_v4  ;;  %v3598_v4 = vld [vmem:[#allocation8 + $0x304] sm:$0xf0]  ;;  %v978_v6 = vpop.f32.mrf.mxu2  ;;  %v3539_v60 = vld [vmem:[#allocation8 + $0x134] sm:$0xf] }
  0xdd   :  { %v3884_v5 = vpack.c.bf16 %v1101_v62, %v1101_v62  ;;  %v3183_v8 = vor.u32 %v3598_v4, %v3182_v2  ;;  %v979_v11 = vadd.f32 %v978_v6, %v238_v52  ;;  %1985 = vmatpush.bf16.msrb.mxu3 %v3263_v63  ;;  %v3541_v52 = vld [vmem:[#allocation8 + $0x144] sm:$0xf]  ;;  %v2955_v62 = vor.u32 %v3539_v60, %v2952_v61  ;;  %v2944_v6 = vld [vmem:[#allocation8 + $0x128] sm:$0xf0] }
  0xde   :  { %1994 = vmatpush.bf16.msra.mxu0 %v2851_v14  ;;  %v991_v12 = vpop.f32.mrf.mxu3  ;;  %v954_v13 = vpop.f32.mrf.mxu0  ;;  %v3503_v14 = vld [vmem:[#allocation8 + $0x14] sm:$0xf]  ;;  %v3557_v63 = vld [vmem:[#allocation8 + $0x1c4] sm:$0xf]  ;;  %v239_v2 = vperm.slane %v3872_v37, 4 }
  0xdf   :  { %1923 = vmatmul.bf16.vlgmr.msra.gmra.mxu2 %v3884_v5  ;;  %v992_v23 = vadd.f32 %v991_v12, %v979_v11  ;;  %v2811_v26 = vor.u32 %v3503_v14, %v2808_v15  ;;  %v3027_v1 = vor.u32 %v3557_v63, %v3024_v0  ;;  %v3537_v4 = vld [vmem:[#allocation8 + $0x124] sm:$0xf]  ;;  %v3535_v14 = vld [vmem:[#allocation8 + $0x114] sm:$0xf]  ;;  %v2936_v15 = vld [vmem:[#allocation8 + $0x118] sm:$0xf0] }
  0xe0   :  { %2007 = vmatpush.bf16.msra.mxu1 %v2915_v19  ;;  %v967_v19 = vpop.f32.mrf.mxu1  ;;  %1974 = vmatpush.bf16.msrb.mxu2 %v3183_v8  ;;  %v3555_v8 = vld [vmem:[#allocation8 + $0x1b4] sm:$0xf]  ;;  %v3088_v60 = vld [vmem:[#allocation8 + $0x248] sm:$0xf0] }
  0xe1   :  { %1986 = vmatpush.bf16.msrb.mxu3 %v3255_v24  ;;  %v3019_v11 = vor.u32 %v3555_v8, %v3016_v9  ;;  %v3112_v19 = vld [vmem:[#allocation8 + $0x278] sm:$0xf0]  ;;  %v3591_v0 = vld [vmem:[#allocation8 + $0x2d4] sm:$0xf]  ;;  %v3589_v8 = vld [vmem:[#allocation8 + $0x2c4] sm:$0xf] }
  0xe2   :  { %1995 = vmatpush.bf16.msra.mxu0 %v2843_v27  ;;  %v3501_v27 = vld [vmem:[#allocation8 + $0x4] sm:$0xf]  ;;  %v3152_v9 = vld [vmem:[#allocation8 + $0x2c8] sm:$0xf0] }
  0xe3   :  { %v2803_v43 = vor.u32 %v3501_v27, %v2800_v31  ;;  %v2928_v27 = vld [vmem:[#allocation8 + $0x108] sm:$0xf0] }
  0xe4   :  { %2008 = vmatpush.bf16.msra.mxu1 %v2907_v30  ;;  %2019 = vmatpush.bf16.msra.mxu2 %v2987_v17  ;;  %v1102_v30 = vmax.f32 %v992_v23, 0.0  ;;  %v2939_v17 = vor.u32 %v3535_v14, %v2936_v15  ;;  %v3011_v23 = vor.u32 %v3553_v20, %v3008_v21  ;;  %v3587_v15 = vld [vmem:[#allocation8 + $0x2b4] sm:$0xf] }
  0xe5   :  { %1987 = vmatpush.bf16.msrb.mxu3 %v3247_v40 }
  0xe6   :  { %1996 = vmatpush.bf16.msra.mxu0 %v2835_v38  ;;  %v2864_v38 = vld [vmem:[#allocation8 + $0x88] sm:$0xf0]  ;;  %v3887_v39 = vpack.c.bf16 %v1102_v30, %v1102_v30  ;;  %v993_v46 = vpop.f32.mrf.mxu3 }
  0xe7   :  { %v2867_v47 = vor.u32 %v3517_v36, %v2864_v38  ;;  %v3096_v46 = vld [vmem:[#allocation8 + $0x258] sm:$0xf0] }
  0xe8   :  { %2009 = vmatpush.bf16.msra.mxu1 %v2899_v55  ;;  %v980_v55 = vpop.f32.mrf.mxu2  ;;  %2020 = vmatpush.bf16.msra.mxu2 %v2979_v33  ;;  %v3104_v33 = vld [vmem:[#allocation8 + $0x268] sm:$0xf0] }
  0xe9   :  { %1936 = vmatmul.bf16.vlgmr.msra.gmra.mxu3 %v3887_v39 }
  0xea   :  { %1997 = vmatpush.bf16.msra.mxu0 %v2827_v53  ;;  %2032 = vmatpush.bf16.msra.mxu3 %v3051_v44  ;;  %v2960_v53 = vld [vmem:[#allocation8 + $0x148] sm:$0xf0]  ;;  %v3595_v44 = vld [vmem:[#allocation8 + $0x2f4] sm:$0xf] }
  0xeb   :  { %v2963_v54 = vor.u32 %v3541_v52, %v2960_v53  ;;  %v3099_v53 = vor.u32 %v3575_v45, %v3096_v46 }
  0xec   :  { %2010 = vmatpush.bf16.msra.mxu1 %v2891_v59  ;;  %2021 = vmatpush.bf16.msra.mxu2 %v2971_v48  ;;  %v3035_v59 = vor.u32 %v3559_v56, %v3032_v58  ;;  %v2992_v48 = vld [vmem:[#allocation8 + $0x188] sm:$0xf0] }
  0xed   :  { %v3168_v56 = vld [vmem:[#allocation8 + $0x2e8] sm:$0xf0] }
  0xee   :  { %1998 = vmatpush.bf16.msra.mxu0 %v2819_v7  ;;  %2033 = vmatpush.bf16.msra.mxu3 %v3043_v51  ;;  %v2947_v7 = vor.u32 %v3537_v4, %v2944_v6  ;;  %v3179_v51 = vor.u32 %v3595_v44, %v3176_v3  ;;  %v3080_v4 = vld [vmem:[#allocation8 + $0x238] sm:$0xf0] }
  0xf0   :  { %2011 = vmatpush.bf16.msra.mxu1 %v2883_v16  ;;  %2022 = vmatpush.bf16.msra.mxu2 %v2963_v54  ;;  %v3579_v16 = vld [vmem:[#allocation8 + $0x274] sm:$0xf]  ;;  %v3593_v54 = vld [vmem:[#allocation8 + $0x2e4] sm:$0xf] }
  0xf1   :  { %v3115_v28 = vor.u32 %v3579_v16, %v3112_v19  ;;  %v3144_v16 = vld [vmem:[#allocation8 + $0x2b8] sm:$0xf0] }
  0xf2   :  { %1999 = vmatpush.bf16.msra.mxu0 %v2811_v26  ;;  %2034 = vmatpush.bf16.msra.mxu3 %v3035_v59  ;;  %v3533_v26 = vld [vmem:[#allocation8 + $0x104] sm:$0xf]  ;;  %v3147_v20 = vor.u32 %v3587_v15, %v3144_v16  ;;  %v3200_v16 = vld [vmem:[#allocation8 + $0x328] sm:$0xf0] }
  0xf3   :  { %v2931_v30 = vor.u32 %v3533_v26, %v2928_v27  ;;  %v3573_v59 = vld [vmem:[#allocation8 + $0x244] sm:$0xf]  ;;  %v3136_v26 = vld [vmem:[#allocation8 + $0x2a8] sm:$0xf0] }
  0xf4   :  { %2012 = vmatpush.bf16.msra.mxu1 %v2875_v32  ;;  %2023 = vmatpush.bf16.msra.mxu2 %v2955_v62  ;;  %v3171_v62 = vor.u32 %v3593_v54, %v3168_v56  ;;  %v3091_v63 = vor.u32 %v3573_v59, %v3088_v60  ;;  %v3565_v27 = vld [vmem:[#allocation8 + $0x204] sm:$0xf]  ;;  %v3224_v54 = vld [vmem:[#allocation8 + $0x358] sm:$0xf0] }
  0xf5   :  { %v3601_v15 = vld [vmem:[#allocation8 + $0x324] sm:$0xf] }
  0xf6   :  { %2000 = vmatpush.bf16.msra.mxu0 %v2803_v43  ;;  %v1004_v10 = vpop.f32.mrf.mxu0  ;;  %2035 = vmatpush.bf16.msra.mxu3 %v3027_v1  ;;  %v3107_v43 = vor.u32 %v3577_v29, %v3104_v33  ;;  %v3160_v1 = vld [vmem:[#allocation8 + $0x2d8] sm:$0xf0]  ;;  %v3611_v29 = vld [vmem:[#allocation8 + $0x374] sm:$0xf] }
  0xf7   :  { %v1005_v12 = vadd.f32 %v1004_v10, %v239_v2  ;;  %v3571_v2 = vld [vmem:[#allocation8 + $0x234] sm:$0xf]  ;;  %v3163_v6 = vor.u32 %v3591_v0, %v3160_v1  ;;  %v3569_v10 = vld [vmem:[#allocation8 + $0x224] sm:$0xf] }
  0xf8   :  { %2013 = vmatpush.bf16.msra.mxu1 %v2867_v47  ;;  %v1017_v13 = vpop.f32.mrf.mxu1  ;;  %2024 = vmatpush.bf16.msra.mxu2 %v2947_v7  ;;  %v3549_v47 = vld [vmem:[#allocation8 + $0x184] sm:$0xf]  ;;  %v3083_v7 = vor.u32 %v3571_v2, %v3080_v4  ;;  %v3216_v2 = vld [vmem:[#allocation8 + $0x348] sm:$0xf0] }
  0xf9   :  { %v1018_v18 = vadd.f32 %v1017_v13, %v1005_v12  ;;  %v2995_v50 = vor.u32 %v3549_v47, %v2992_v48  ;;  %v3155_v12 = vor.u32 %v3589_v8, %v3152_v9  ;;  %v241_v13 = vperm.slane %v3872_v37, 6  ;;  %v3120_v47 = vld [vmem:[#allocation8 + $0x288] sm:$0xf0]  ;;  %v3605_v1 = vld [vmem:[#allocation8 + $0x344] sm:$0xf] }
  0xfa   :  { %2036 = vmatpush.bf16.msra.mxu3 %v3019_v11  ;;  %v3072_v11 = vld [vmem:[#allocation8 + $0x228] sm:$0xf0]  ;;  %v3288_v8 = vld [vmem:[#allocation8 + $0x3d8] sm:$0xf0]  ;;  %v3603_v9 = vld [vmem:[#allocation8 + $0x334] sm:$0xf] }
  0xfb   :  { %v1103_v24 = vmax.f32 %v1018_v18, 0.0  ;;  %v3075_v14 = vor.u32 %v3569_v10, %v3072_v11  ;;  %v3064_v18 = vld [vmem:[#allocation8 + $0x218] sm:$0xf0] }
  0xfc   :  { %2025 = vmatpush.bf16.msra.mxu2 %v2939_v17  ;;  %v1030_v32 = vpop.f32.mrf.mxu2  ;;  %v3567_v17 = vld [vmem:[#allocation8 + $0x214] sm:$0xf]  ;;  %v3208_v10 = vld [vmem:[#allocation8 + $0x338] sm:$0xf0] }
  0xfd   :  { %v3892_v31 = vpack.c.bf16 %v1103_v24, %v1103_v24  ;;  %v1031_v36 = vadd.f32 %v1030_v32, %v240_v22  ;;  %v3585_v24 = vld [vmem:[#allocation8 + $0x2a4] sm:$0xf]  ;;  %v242_v32 = vperm.slane %v3872_v37, 7 }
  0xfe   :  { %v1043_v38 = vpop.f32.mrf.mxu3  ;;  %v1006_v40 = vpop.f32.mrf.mxu0  ;;  %2037 = vmatpush.bf16.msra.mxu3 %v3011_v23  ;;  %v3067_v23 = vor.u32 %v3567_v17, %v3064_v18  ;;  %v3139_v33 = vor.u32 %v3585_v24, %v3136_v26  ;;  %v3581_v37 = vld [vmem:[#allocation8 + $0x284] sm:$0xf]  ;;  %v3203_v18 = vor.u32 %v3601_v15, %v3200_v16  ;;  %v3264_v26 = vld [vmem:[#allocation8 + $0x3a8] sm:$0xf0] }
  0xff   :  { %1949 = vmatmul.bf16.vlgmr.msrb.gmra.mxu0 %v3892_v31  ;;  %v1044_v55 = vadd.f32 %v1043_v38, %v1031_v36  ;;  %v3583_v36 = vld [vmem:[#allocation8 + $0x294] sm:$0xf]  ;;  %v3128_v38 = vld [vmem:[#allocation8 + $0x298] sm:$0xf0]  ;;  %v3617_v24 = vld [vmem:[#allocation8 + $0x3a4] sm:$0xf] }
 0x100   :  { %v1019_v42 = vpop.f32.mrf.mxu1  ;;  %2026 = vmatpush.bf16.msra.mxu2 %v2931_v30  ;;  %2045 = vmatpush.bf16.msrb.mxu0 %v3115_v28  ;;  %v3240_v30 = vld [vmem:[#allocation8 + $0x378] sm:$0xf0]  ;;  %v3131_v45 = vor.u32 %v3583_v36, %v3128_v38  ;;  %v3916_v36 = vld [vmem:[%s3931_s4] sm:$0x3] }
 0x101   :  { %v1104_v49 = vmax.f32 %v1044_v55, 0.0  ;;  %v3243_v40 = vor.u32 %v3611_v29, %v3240_v30  ;;  %v3609_v55 = vld [vmem:[#allocation8 + $0x364] sm:$0xf]  ;;  %v3615_v29 = vld [vmem:[#allocation8 + $0x394] sm:$0xf]  ;;  %v3638_v16 = vld [vmem:[#allocation10 + $0x48] sm:$0xff] }
 0x102   :  { %2038 = vmatpush.bf16.msra.mxu3 %v3003_v41  ;;  %v3256_v30 = vld [vmem:[#allocation8 + $0x398] sm:$0xf0] }
 0x103   :  { %v3895_v52 = vpack.c.bf16 %v1104_v49, %v1104_v49 }
 0x104   :  { %2046 = vmatpush.bf16.msrb.mxu0 %v3107_v43  ;;  %v1032_v58 = vpop.f32.mrf.mxu2  ;;  %v3232_v43 = vld [vmem:[#allocation8 + $0x368] sm:$0xf0] }
 0x105   :  { %1962 = vmatmul.bf16.vlgmr.msrb.gmra.mxu1 %v3895_v52  ;;  %v3235_v49 = vor.u32 %v3609_v55, %v3232_v43  ;;  %v3123_v58 = vor.u32 %v3581_v37, %v3120_v47  ;;  %v3634_v47 = vld [vmem:[#allocation10 + $0x28] sm:$0xff] }
 0x106   :  { %v1045_v61 = vpop.f32.mrf.mxu3  ;;  %2039 = vmatpush.bf16.msra.mxu3 %v2995_v50  ;;  %2058 = vmatpush.bf16.msrb.mxu1 %v3179_v51  ;;  %v3627_v50 = vld [vmem:[#allocation8 + $0x3f4] sm:$0xf]  ;;  %v3304_v51 = vld [vmem:[#allocation8 + $0x3f8] sm:$0xf0] }
 0x107   :  { %v3307_v59 = vor.u32 %v3627_v50, %v3304_v51  ;;  %v3632_v50 = vld [vmem:[#allocation10 + $0x18] sm:$0xff]  ;;  %v3631_v51 = vld [vmem:[#allocation10 + $0x10] sm:$0xff] }
 0x108   :  { %2047 = vmatpush.bf16.msrb.mxu0 %v3099_v53  ;;  %v3607_v53 = vld [vmem:[#allocation8 + $0x354] sm:$0xf] }
 0x109   :  { %v3227_v61 = vor.u32 %v3607_v53, %v3224_v54 }
 0x10a   :  { %2059 = vmatpush.bf16.msrb.mxu1 %v3171_v62  ;;  %v3625_v62 = vld [vmem:[#allocation8 + $0x3e4] sm:$0xf] }
 0x10c   :  { %2048 = vmatpush.bf16.msrb.mxu0 %v3091_v63  ;;  %v3296_v63 = vld [vmem:[#allocation8 + $0x3e8] sm:$0xf0] }
 0x10e   :  { %2060 = vmatpush.bf16.msrb.mxu1 %v3163_v6  ;;  %v3299_v6 = vor.u32 %v3625_v62, %v3296_v63  ;;  %v3643_v62 = vld [vmem:[#allocation10 + $0x70] sm:$0xff] }
 0x10f   :  { %2001 = vmatmul.bf16.vlgmr.msra.gmra.mxu0 %v3876_v25  ;;  %v3056_v25 = vld [vmem:[#allocation8 + $0x208] sm:$0xf0] }
 0x110   :  { %2049 = vmatpush.bf16.msrb.mxu0 %v3083_v7  ;;  %v3059_v35 = vor.u32 %v3565_v27, %v3056_v25  ;;  %v3219_v7 = vor.u32 %v3605_v1, %v3216_v2  ;;  %v3597_v27 = vld [vmem:[#allocation8 + $0x304] sm:$0xf]  ;;  %v3184_v25 = vld [vmem:[#allocation8 + $0x308] sm:$0xf0] }
 0x111   :  { %v3642_v1 = vld [vmem:[#allocation10 + $0x68] sm:$0xff]  ;;  %v3641_v2 = vld [vmem:[#allocation10 + $0x60] sm:$0xff] }
 0x112   :  { %2061 = vmatpush.bf16.msrb.mxu1 %v3155_v12  ;;  %v3211_v12 = vor.u32 %v3603_v9, %v3208_v10  ;;  %v3639_v10 = vld [vmem:[#allocation10 + $0x50] sm:$0xff] }
 0x114   :  { %2050 = vmatpush.bf16.msrb.mxu0 %v3075_v14  ;;  %v3280_v14 = vld [vmem:[#allocation8 + $0x3c8] sm:$0xf0] }
 0x115   :  { %2014 = vmatmul.bf16.vlgmr.msra.gmra.mxu1 %v3879_v57 }
 0x116   :  { %v1056_v19 = vpop.f32.mrf.mxu0  ;;  %2062 = vmatpush.bf16.msrb.mxu1 %v3147_v20  ;;  %v3272_v20 = vld [vmem:[#allocation8 + $0x3b8] sm:$0xf0] }
 0x117   :  { %v1057_v21 = vadd.f32 %v1056_v19, %v241_v13  ;;  %v3621_v13 = vld [vmem:[#allocation8 + $0x3c4] sm:$0xf]  ;;  %v3619_v19 = vld [vmem:[#allocation8 + $0x3b4] sm:$0xf] }
 0x118   :  { %v1069_v22 = vpop.f32.mrf.mxu1  ;;  %2051 = vmatpush.bf16.msrb.mxu0 %v3067_v23  ;;  %v3283_v17 = vor.u32 %v3621_v13, %v3280_v14 }
 0x119   :  { %v1070_v28 = vadd.f32 %v1069_v22, %v1057_v21  ;;  %v3599_v21 = vld [vmem:[#allocation8 + $0x314] sm:$0xf]  ;;  %v3275_v22 = vor.u32 %v3619_v19, %v3272_v20 }
 0x11a   :  { %2063 = vmatpush.bf16.msrb.mxu1 %v3139_v33  ;;  %v3613_v33 = vld [vmem:[#allocation8 + $0x384] sm:$0xf] }
 0x11b   :  { %v1105_v34 = vmax.f32 %v1070_v28, 0.0  ;;  %v3267_v28 = vor.u32 %v3617_v24, %v3264_v26  ;;  %v1246_v26 = vperm.slane %v3916_v36, 1 }
 0x11c   :  { %v1082_v42 = vpop.f32.mrf.mxu2  ;;  %2052 = vmatpush.bf16.msrb.mxu0 %v3059_v35 }
 0x11d   :  { %v3902_v41 = vpack.c.bf16 %v1105_v34, %v1105_v34  ;;  %v1083_v44 = vadd.f32 %v1082_v42, %v242_v32  ;;  %v3259_v32 = vor.u32 %v3615_v29, %v3256_v30  ;;  %v3248_v34 = vld [vmem:[#allocation8 + $0x388] sm:$0xf0] }
 0x11e   :  { %v1095_v3 = vpop.f32.mrf.mxu3  ;;  %v1058_v57 = vpop.f32.mrf.mxu0  ;;  %2064 = vmatpush.bf16.msrb.mxu1 %v3131_v45  ;;  %v3251_v35 = vor.u32 %v3613_v33, %v3248_v34  ;;  %v3636_v45 = vld [vmem:[#allocation10 + $0x38] sm:$0xff] }
 0x11f   :  { %1975 = vmatmul.bf16.vlgmr.msrb.gmra.mxu2 %v3902_v41  ;;  %v1096_v48 = vadd.f32 %v1095_v3, %v1083_v44  ;;  %2053 = vmatmul.bf16.vlgmr.msrb.gmra.mxu0 %v3892_v31  ;;  %v3623_v31 = vld [vmem:[#allocation8 + $0x3d4] sm:$0xf] }
 0x120   :  { %v1071_v46 = vpop.f32.mrf.mxu1  ;;  %2071 = vmatpush.bf16.msrb.mxu2 %v3243_v40  ;;  %v3291_v11 = vor.u32 %v3623_v31, %v3288_v8  ;;  %2231 = vmatpush.bf16.msra.mxu0 %v3636_v45  ;;  %v3640_v31 = vld [vmem:[#allocation10 + $0x58] sm:$0xff] }
 0x121   :  { %v1106_v56 = vmax.f32 %v1096_v48, 0.0  ;;  %v3635_v46 = vld [vmem:[#allocation10 + $0x30] sm:$0xff]  ;;  %v3633_v48 = vld [vmem:[#allocation10 + $0x20] sm:$0xff] }
 0x122   :  { %2065 = vmatpush.bf16.msrb.mxu1 %v3123_v58  ;;  %v3629_v58 = vld [vmem:[#allocation10] sm:$0xff] }
 0x123   :  { %v3906_v60 = vpack.c.bf16 %v1106_v56, %v1106_v56  ;;  %v3630_v56 = vld [vmem:[#allocation10 + $0x8] sm:$0xff] }
 0x124   :  { %2072 = vmatpush.bf16.msrb.mxu2 %v3235_v49  ;;  %v1084_v0 = vpop.f32.mrf.mxu2  ;;  %2232 = vmatpush.bf16.msra.mxu0 %v3635_v46 }
 0x125   :  { %1988 = vmatmul.bf16.vlgmr.msrb.gmra.mxu3 %v3906_v60  ;;  %2066 = vmatmul.bf16.vlgmr.msrb.gmra.mxu1 %v3895_v52  ;;  %v3192_v52 = vld [vmem:[#allocation8 + $0x318] sm:$0xf0] }
 0x126   :  { %v1097_v4 = vpop.f32.mrf.mxu3  ;;  %2084 = vmatpush.bf16.msrb.mxu3 %v3307_v59  ;;  %v3195_v23 = vor.u32 %v3599_v21, %v3192_v52  ;;  %v3637_v21 = vld [vmem:[#allocation10 + $0x40] sm:$0xff] }
 0x128   :  { %2073 = vmatpush.bf16.msrb.mxu2 %v3227_v61  ;;  %2233 = vmatpush.bf16.msra.mxu0 %v3634_v47  ;;  %v3644_v61 = vld [vmem:[#allocation10 + $0x78] sm:$0xff] }
 0x129   :  { %2244 = vmatpush.bf16.msra.mxu1 %v3644_v61 }
 0x12a   :  { %2085 = vmatpush.bf16.msrb.mxu3 %v3299_v6 }
 0x12c   :  { %2074 = vmatpush.bf16.msrb.mxu2 %v3219_v7  ;;  %2234 = vmatpush.bf16.msra.mxu0 %v3633_v48 }
 0x12d   :  { %2245 = vmatpush.bf16.msra.mxu1 %v3643_v62 }
 0x12e   :  { %2086 = vmatpush.bf16.msrb.mxu3 %v3291_v11 }
 0x12f   :  { %2027 = vmatmul.bf16.vlgmr.msra.gmra.mxu2 %v3884_v5  ;;  %v3187_v5 = vor.u32 %v3597_v27, %v3184_v25 }
 0x130   :  { %2075 = vmatpush.bf16.msrb.mxu2 %v3211_v12  ;;  %2235 = vmatpush.bf16.msra.mxu0 %v3632_v50 }
 0x131   :  { %2246 = vmatpush.bf16.msra.mxu1 %v3642_v1 }
 0x132   :  { %2087 = vmatpush.bf16.msrb.mxu3 %v3283_v17 }
 0x134   :  { %2076 = vmatpush.bf16.msrb.mxu2 %v3203_v18  ;;  %2236 = vmatpush.bf16.msra.mxu0 %v3631_v51 }
 0x135   :  { %2040 = vmatmul.bf16.vlgmr.msra.gmra.mxu3 %v3887_v39  ;;  %v1245_v39 = vperm.slane %v3916_v36, 0  ;;  %2247 = vmatpush.bf16.msra.mxu1 %v3641_v2 }
 0x136   :  { %2088 = vmatpush.bf16.msrb.mxu3 %v3275_v22 }
 0x138   :  { %2077 = vmatpush.bf16.msrb.mxu2 %v3195_v23  ;;  %2237 = vmatpush.bf16.msra.mxu0 %v3630_v56 }
 0x139   :  { %2248 = vmatpush.bf16.msra.mxu1 %v3640_v31 }
 0x13a   :  { %2089 = vmatpush.bf16.msrb.mxu3 %v3267_v28 }
 0x13c   :  { %2078 = vmatpush.bf16.msrb.mxu2 %v3187_v5  ;;  %v1898_v38 = vpop.f32.mrf.mxu0  ;;  %2238 = vmatpush.bf16.msra.mxu0 %v3629_v58 }
 0x13d   :  { %v1899_v40 = vadd.f32 %v1898_v38, %v1245_v39  ;;  %2249 = vmatpush.bf16.msra.mxu1 %v3639_v10 }
 0x13e   :  { %2090 = vmatpush.bf16.msrb.mxu3 %v3259_v32 }
 0x13f   :  { %2079 = vmatmul.bf16.vlgmr.msrb.gmra.mxu2 %v3902_v41 }
 0x141   :  { %2250 = vmatpush.bf16.msra.mxu1 %v3638_v16 }
 0x142   :  { %2091 = vmatpush.bf16.msrb.mxu3 %v3251_v35  ;;  %v1911_v42 = vpop.f32.mrf.mxu1 }
 0x143   :  { %v1912_v55 = vadd.f32 %v1911_v42, %v1899_v40 }
 0x144   :  { %v1900_v43 = vpop.f32.mrf.mxu0 }
 0x145   :  { %2092 = vmatmul.bf16.vlgmr.msrb.gmra.mxu3 %v3906_v60  ;;  %2251 = vmatpush.bf16.msra.mxu1 %v3637_v21 }
 0x14a   :  { %v1913_v44 = vpop.f32.mrf.mxu1 }
 0x162   :  { %v1924_v3 = vpop.f32.mrf.mxu2 }
 0x163   :  { %v1925_v7 = vadd.f32 %v1924_v3, %v1912_v55 }
 0x16a   :  { %v1926_v41 = vpop.f32.mrf.mxu2 }
 0x16c   :  { %v1937_v57 = vpop.f32.mrf.mxu3 }
 0x16d   :  { %v1938_v8 = vadd.f32 %v1937_v57, %v1925_v7  ;;  %v2134_v57 = vstv %s3933_s6 }
 0x174   :  { %v1939_v37 = vpop.f32.mrf.mxu3 }
 0x17c   :  { %v1950_v49 = vpop.f32.mrf.mxu0 }
 0x17d   :  { %v1951_v11 = vadd.f32 %v1950_v49, %v1938_v8 }
 0x182   :  { %v1963_v53 = vpop.f32.mrf.mxu1 }
 0x183   :  { %v1964_v12 = vadd.f32 %v1963_v53, %v1951_v11 }
 0x184   :  { %v1952_v54 = vpop.f32.mrf.mxu0 }
 0x18a   :  { %v1965_v59 = vpop.f32.mrf.mxu1 }
 0x18c   :  { %v2002_v60 = vpop.f32.mrf.mxu0 }
 0x18d   :  { %v2003_v27 = vadd.f32 %v2002_v60, %v1246_v26 }
 0x192   :  { %v2015_v63 = vpop.f32.mrf.mxu1 }
 0x193   :  { %v2016_v28 = vadd.f32 %v2015_v63, %v2003_v27 }
 0x194   :  { %v2004_v0 = vpop.f32.mrf.mxu0 }
 0x19a   :  { %v2017_v4 = vpop.f32.mrf.mxu1 }
 0x19c   :  { %v2054_v6 = vpop.f32.mrf.mxu0 }
 0x1a2   :  { %v1976_v9 = vpop.f32.mrf.mxu2  ;;  %v2067_v13 = vpop.f32.mrf.mxu1 }
 0x1a3   :  { %v1977_v15 = vadd.f32 %v1976_v9, %v1964_v12 }
 0x1a4   :  { %v2056_v14 = vpop.f32.mrf.mxu0 }
 0x1a8   :  { %v1989_v17 = vpop.f32.mrf.mxu3 }
 0x1a9   :  { %v1990_v18 = vadd.f32 %v1989_v17, %v1977_v15 }
 0x1aa   :  { %v1978_v19 = vpop.f32.mrf.mxu2  ;;  %v2069_v22 = vpop.f32.mrf.mxu1 }
 0x1ab   :  { %v2097_v20 = vmax.f32 %v1990_v18, 0.0 }
 0x1ad   :  { %v2099_v52 = vpack.c.bf16 %v2097_v20, %v2097_v20 }
 0x1af   :  { %2239 = vmatmul.bf16.vlgmr.msra.gmra.mxu0 %v2099_v52 }
 0x1b0   :  { %v1991_v23 = vpop.f32.mrf.mxu3 }
 0x1b2   :  { %v2028_v24 = vpop.f32.mrf.mxu2 }
 0x1b3   :  { %v2029_v29 = vadd.f32 %v2028_v24, %v2016_v28 }
 0x1b8   :  { %v2041_v25 = vpop.f32.mrf.mxu3 }
 0x1b9   :  { %v2042_v30 = vadd.f32 %v2041_v25, %v2029_v29 }
 0x1ba   :  { %v2030_v5 = vpop.f32.mrf.mxu2 }
 0x1bb   :  { %v2055_v33 = vadd.f32 %v2054_v6, %v2042_v30 }
 0x1bd   :  { %v2068_v35 = vadd.f32 %v2067_v13, %v2055_v33 }
 0x1c0   :  { %v2043_v32 = vpop.f32.mrf.mxu3 }
 0x1c2   :  { %v2080_v34 = vpop.f32.mrf.mxu2 }
 0x1c3   :  { %v2081_v39 = vadd.f32 %v2080_v34, %v2068_v35 }
 0x1c8   :  { %v2093_v38 = vpop.f32.mrf.mxu3 }
 0x1c9   :  { %v2094_v40 = vadd.f32 %v2093_v38, %v2081_v39 }
 0x1ca   :  { %v2082_v42 = vpop.f32.mrf.mxu2 }
 0x1cb   :  { %v2098_v55 = vmax.f32 %v2094_v40, 0.0 }
 0x1cd   :  { %v2100_v43 = vpack.c.bf16 %v2098_v55, %v2098_v55 }
 0x1cf   :  { %2252 = vmatmul.bf16.vlgmr.msra.gmra.mxu1 %v2100_v43 }
 0x1d0   :  { %v2095_v44 = vpop.f32.mrf.mxu3 }
 0x22c   :  { %v2240_v3 = vpop.f32.mrf.mxu0 }
 0x22d   :  { %v2241_v41 = vadd.f32 %v2240_v3, %v2134_v57 }
 0x234   :  { %v2242_v36 = vpop.f32.mrf.mxu0 }
 0x24c   :  { %v2253_v45 = vpop.f32.mrf.mxu1 }
 0x24d   :  { %v2254_v46 = vadd.f32 %v2253_v45, %v2241_v41 }
 0x24f   :  { %v3372_v37 = vmul.f32 -1.442695, %v2254_v46 }
 0x251   :  { %3656 = vpow2.f32 %v3372_v37 }
 0x254   :  { %v2255_v47 = vpop.f32.mrf.mxu1 }
 0x257   :  { %v3657_v48 = vpop.eup %3656 }
 0x258   :  { %v2260_v49 = vadd.f32 1.0, %v3657_v48 }
 0x25a   :  { %3658 = vrcp.f32 %v2260_v49  ;;  %v2272_v54 = vand.u32 2147483648, %v2260_v49  ;;  %v2270_v58 = vand.u32 2147483647, %v2260_v49  ;;  %vm2266_vm1 = vweird.f32 %v2260_v49 }
 0x25c   :  { %v2273_v60 = vor.u32 1.1754944e-38, %v2272_v54  ;;  %vm2271_vm3 = vcmp.eq.f32.partialorder %v2270_v58, 8.507059e+37 }
 0x260   :  { %v3659_v50 = vpop.eup %3658 }
 0x261   :  { %v2262_v51 = vmul.f32 %v3659_v50, %v2260_v49  ;;  %vm2267_vm0 = vweird.f32 %v3659_v50 }
 0x262   :  { %vm2268_vm2 = vmor %vm2266_vm1, %vm2267_vm0 }
 0x263   :  { %v2263_v53 = vsub.f32 1.0, %v2262_v51 }
 0x265   :  { %v2264_v56 = vmul.f32 %v3659_v50, %v2263_v53 }
 0x267   :  { %v2265_v59 = vadd.f32 %v3659_v50, %v2264_v56 }
 0x269   :  { %v2269_v61 = vsel %vm2268_vm2, %v3659_v50, %v2265_v59 }
 0x26a   :  { %v2274_v62 = vsel %vm2271_vm3, %v2273_v60, %v2269_v61 }
 0x26b   :  { %2276 = vst [vmem:[%s3934_s7] sm:$0xff] %v2274_v62 }
 0x26c   :  { %2281 = vsyncpa [#allocation4], 1 }
 0x26d   :  { %2282 = vsyncpa [#allocation6], 1 }
 0x26e   :  { %2283 = vsyncpa [#allocation9], 1 }

</bundles_post_ra>
